<compile_context>
chip_gen: v6e
topology: v6e:2x2x1
jax: 0.10.0
libtpu: 0.0.40
codegen_flags: <defaults>
</compile_context>

<pallas_src>
import functools

import jax
import jax.numpy as jnp
from jax import lax
from jax.experimental import pallas as pl
from jax.experimental.pallas import tpu as pltpu


# ----------------------------------------------------------------------------
# Pallas kernel: zero-insertion upsample of a (TR, W) row tile -> (TR*f, W*f)
# ----------------------------------------------------------------------------
def _zero_upsample_kernel(x_ref, o_ref, *, factor):
    f = factor
    x = x_ref[...]                                   # (TR, W)
    TR, W = x.shape

    # Lane-axis zero insertion: (TR, W) -> (TR, W*f); x[r, j] lands at col j*f.
    xw = jnp.broadcast_to(x[:, :, None], (TR, W, f)).reshape(TR, W * f)
    col = lax.broadcasted_iota(jnp.int32, (TR, W * f), 1)
    xw = jnp.where(col % f == 0, xw, jnp.zeros_like(xw))

    # Sublane-axis zero insertion: (TR, W*f) -> (TR*f, W*f); row i -> row i*f.
    y = jnp.broadcast_to(xw[:, None, :], (TR, f, W * f)).reshape(TR * f, W * f)
    row = lax.broadcasted_iota(jnp.int32, (TR * f, W * f), 0)
    o_ref[...] = jnp.where(row % f == 0, y, jnp.zeros_like(y))


def _pick_row_tile(nrows, w, f, itemsize):
    """Largest row tile (multiple of 8, dividing nrows) whose double-buffered
    in+out blocks stay under a small VMEM budget, preferring >=4 grid steps."""
    budget = 2 * 1024 * 1024  # bytes; tiny vs. scoped VMEM on v5e/v6e/v7x
    cands = [d for d in range(8, nrows + 1, 8) if nrows % d == 0] or [nrows]
    within = [d for d in cands
              if 2 * (d * w + d * f * w * f) * itemsize <= budget]
    within = within or [min(cands)]
    piped = [d for d in within if nrows // d >= 4]
    return max(piped) if piped else max(within)


# ----------------------------------------------------------------------------
# Wrapper: NCHW -> NCHW, matching the PyTorch module's forward
# ----------------------------------------------------------------------------
def zero_upsampling(x, factor):
    """x: (N, C, H, W) -> (N, C, H*factor, W*factor) via zero insertion."""
    f = int(factor)
    N, C, H, W = x.shape
    if f == 1:
        return x

    nrows = N * C * H
    x2d = x.reshape(nrows, W)                      # free contiguous reshape
    TR = _pick_row_tile(nrows, W, f, x.dtype.itemsize)
    grid = (nrows // TR,)

    kernel = functools.partial(_zero_upsample_kernel, factor=f)
    out2d = pl.pallas_call(
        kernel,
        out_shape=jax.ShapeDtypeStruct((nrows * f, W * f), x.dtype),
        grid=grid,
        in_specs=[pl.BlockSpec((TR, W), lambda r: (r, 0))],
        out_specs=pl.BlockSpec((TR * f, W * f), lambda r: (r, 0)),
        compiler_params=pltpu.CompilerParams(
            dimension_semantics=("parallel",)),
    )(x2d)
    return out2d.reshape(N, C, H * f, W * f)       # free contiguous reshape


if __name__ == "__main__":
    key = jax.random.PRNGKey(0)
    N, C, H, W = 2, 4, 16, 16
    factor = 2

    x = jax.random.normal(key, (N, C, H, W), jnp.float32)

    fwd = jax.jit(functools.partial(zero_upsampling, factor=factor))
    y = fwd(x)
    jax.block_until_ready(y)

    assert y.shape == (N, C, H * factor, W * factor), y.shape
    assert jnp.all(jnp.isfinite(y))

    # Reference: conv_transpose2d with the one-hot (0,0) kernel == zero insertion.
    ref = jnp.zeros((N, C, H * factor, W * factor), x.dtype)
    ref = ref.at[:, :, ::factor, ::factor].set(x)
    assert jnp.array_equal(y, ref)

    print("KERNEL_OK")
</pallas_src>

<mosaic_0001>
module attributes {stable_mosaic.version = 11 : i64} {
  func.func @_zero_upsample_kernel(%arg0: i32, %arg1: memref<32x16xf32, #tpu.memory_space<vmem>>, %arg2: memref<64x32xf32, #tpu.memory_space<vmem>>) attributes {dimension_semantics = [#tpu.dimension_semantics<parallel>], iteration_bounds = array<i64: 4>, scalar_prefetch = 0 : i64, scratch_operands = 0 : i64, tpu.core_type = #tpu.core_type<tc>, window_params = [{transform_indices = @transform_0, window_bounds = array<i64: 32, 16>}, {transform_indices = @transform_1, window_bounds = array<i64: 64, 32>}]} {
    %c0 = arith.constant 0 : index
    %c0_0 = arith.constant 0 : index
    %0 = vector.load %arg1[%c0, %c0_0] : memref<32x16xf32, #tpu.memory_space<vmem>>, vector<32x16xf32>
    %1 = vector.shape_cast %0 : vector<32x16xf32> to vector<32x16x1xf32>
    %2 = vector.shape_cast %1 : vector<32x16x1xf32> to vector<32x16x1xf32>
    %3 = vector.broadcast %2 : vector<32x16x1xf32> to vector<32x16x2xf32>
    %4 = vector.shape_cast %3 : vector<32x16x2xf32> to vector<32x32xf32>
    %5 = tpu.iota {dimensions = array<i32: 1>} : vector<32x32xi32>
    %c2_i32 = arith.constant 2 : i32
    %c0_i32 = arith.constant 0 : i32
    %6 = arith.cmpi eq, %c2_i32, %c0_i32 : i32
    %c1_i32 = arith.constant 1 : i32
    %7 = arith.select %6, %c1_i32, %c2_i32 : i32
    %8 = vector.broadcast %7 : i32 to vector<32x32xi32>
    %9 = arith.remsi %5, %8 : vector<32x32xi32>
    %c0_i32_1 = arith.constant 0 : i32
    %10 = vector.broadcast %c0_i32_1 : i32 to vector<32x32xi32>
    %11 = arith.cmpi ne, %9, %10 : vector<32x32xi32>
    %c0_i32_2 = arith.constant 0 : i32
    %12 = vector.broadcast %c0_i32_2 : i32 to vector<32x32xi32>
    %13 = arith.cmpi slt, %9, %12 : vector<32x32xi32>
    %c0_i32_3 = arith.constant 0 : i32
    %14 = arith.cmpi slt, %7, %c0_i32_3 : i32
    %15 = vector.broadcast %14 : i1 to vector<32x32xi1>
    %16 = vector.broadcast %15 : vector<32x32xi1> to vector<32x32xi1>
    %17 = arith.xori %13, %16 : vector<32x32xi1>
    %18 = arith.andi %17, %11 : vector<32x32xi1>
    %19 = vector.broadcast %7 : i32 to vector<32x32xi32>
    %20 = arith.addi %9, %19 : vector<32x32xi32>
    %21 = arith.select %18, %20, %9 : vector<32x32xi1>, vector<32x32xi32>
    %c0_i32_4 = arith.constant 0 : i32
    %22 = vector.broadcast %c0_i32_4 : i32 to vector<32x32xi32>
    %23 = arith.cmpi eq, %21, %22 : vector<32x32xi32>
    %cst = arith.constant 0.000000e+00 : f32
    %24 = vector.broadcast %cst : f32 to vector<32x32xf32>
    %25 = arith.select %23, %4, %24 : vector<32x32xi1>, vector<32x32xf32>
    %26 = vector.shape_cast %25 : vector<32x32xf32> to vector<32x1x32xf32>
    %27 = vector.shape_cast %26 : vector<32x1x32xf32> to vector<32x1x32xf32>
    %28 = vector.broadcast %27 : vector<32x1x32xf32> to vector<32x2x32xf32>
    %29 = vector.shape_cast %28 : vector<32x2x32xf32> to vector<64x32xf32>
    %30 = tpu.iota {dimensions = array<i32: 0>} : vector<64x32xi32>
    %c2_i32_5 = arith.constant 2 : i32
    %c0_i32_6 = arith.constant 0 : i32
    %31 = arith.cmpi eq, %c2_i32_5, %c0_i32_6 : i32
    %c1_i32_7 = arith.constant 1 : i32
    %32 = arith.select %31, %c1_i32_7, %c2_i32_5 : i32
    %33 = vector.broadcast %32 : i32 to vector<64x32xi32>
    %34 = arith.remsi %30, %33 : vector<64x32xi32>
    %c0_i32_8 = arith.constant 0 : i32
    %35 = vector.broadcast %c0_i32_8 : i32 to vector<64x32xi32>
    %36 = arith.cmpi ne, %34, %35 : vector<64x32xi32>
    %c0_i32_9 = arith.constant 0 : i32
    %37 = vector.broadcast %c0_i32_9 : i32 to vector<64x32xi32>
    %38 = arith.cmpi slt, %34, %37 : vector<64x32xi32>
    %c0_i32_10 = arith.constant 0 : i32
    %39 = arith.cmpi slt, %32, %c0_i32_10 : i32
    %40 = vector.broadcast %39 : i1 to vector<64x32xi1>
    %41 = vector.broadcast %40 : vector<64x32xi1> to vector<64x32xi1>
    %42 = arith.xori %38, %41 : vector<64x32xi1>
    %43 = arith.andi %42, %36 : vector<64x32xi1>
    %44 = vector.broadcast %32 : i32 to vector<64x32xi32>
    %45 = arith.addi %34, %44 : vector<64x32xi32>
    %46 = arith.select %43, %45, %34 : vector<64x32xi1>, vector<64x32xi32>
    %c0_i32_11 = arith.constant 0 : i32
    %47 = vector.broadcast %c0_i32_11 : i32 to vector<64x32xi32>
    %48 = arith.cmpi eq, %46, %47 : vector<64x32xi32>
    %cst_12 = arith.constant 0.000000e+00 : f32
    %49 = vector.broadcast %cst_12 : f32 to vector<64x32xf32>
    %50 = arith.select %48, %29, %49 : vector<64x32xi1>, vector<64x32xf32>
    %c0_13 = arith.constant 0 : index
    %c0_14 = arith.constant 0 : index
    %51 = vector.load %arg2[%c0_13, %c0_14] : memref<64x32xf32, #tpu.memory_space<vmem>>, vector<64x32xf32>
    tpu.vector_store %arg2[%c0_13, %c0_14], %50 {strides = array<i32>} : memref<64x32xf32, #tpu.memory_space<vmem>>, vector<64x32xf32>,
    return
  }
  func.func @transform_0(%arg0: i32) -> (i32, i32) {
    %c0_i32 = arith.constant 0 : i32
    %c0_i32_0 = arith.constant 0 : i32
    return %arg0, %c0_i32 : i32, i32
  }
  func.func @transform_1(%arg0: i32) -> (i32, i32) {
    %c0_i32 = arith.constant 0 : i32
    %c0_i32_0 = arith.constant 0 : i32
    return %arg0, %c0_i32 : i32, i32
  }
}

</mosaic_0001>

<bundles_post_ra>
// kernel: zero_upsampling.1
= control target key start
LH: loop header
LB: loop body
LE: loop exit
PB: predicated region body
PF: predicated region fallthrough
CT: control target
= control target key end

     0   :  { %6 = vsyncpa [#allocation3], 0  ;;  %s3972_s0 = inlined_call_operand.hbm [shape: f32[128,16], index: 0, kind: input, shape index: {}]   ;;  %s3973_s1 = inlined_call_operand.hbm [shape: f32[256,32], index: 1, kind: output, shape index: {}]  }
   0x1   :  { %8 = vsyncpa [#allocation3 + $0x1], 0 }
   0x2   :  { %9 = vsyncpa [#allocation4], 0 }
   0x3   :  { %11 = vsyncpa [#allocation4 + $0x1], 0  ;;  %s2814_s6 = smov 0   ;;  %s2816_s7 = smov 0  }
   0x4   :  { %s2818_s8 = smov 0   ;;  %s2820_s9 = smov 0  }
   0x5 LB: > { %s2835_s10 = sadd.s32 4294967295, %s2779_s9   ;;  %s2604_s11 = sadd.s32 4294967294, %s2779_s9   ;;  %s2779_s9 = sphi %s2820_s9, %s4081_s9   ;;  %s2775_s8 = sphi %s2818_s8, %s4080_s8   ;;  %s2771_s7 = sphi %s2816_s7, %s4079_s7   ;;  %s2767_s6 = sphi %s2814_s6, %s4078_s6  }
   0x6   : > { %s2839_s12 = sadd.s32 1, %s2779_s9   ;;  %s24_s13 = sadd.s32 1, %s2775_s8 }
   0x7   : > { %s21_s14 = ssub.s32 %s2779_s9, %s2839_s12  ;;  %p31_p0 = scmp.ne.s32.totalorder %s2775_s8, %s2771_s7 }
   0x8   : > { %p22_p1 = scmp.eq.s32.totalorder %s21_s14, 0  ;;  %p32_p2 = scmp.eq.s32.totalorder %s2779_s9, 0 }
   0x9   : > { %p37_p3 = scmp.ne.s32.totalorder %s2771_s7, %s2767_s6  ;;  %p38_p4 = scmp.eq.s32.totalorder %s2835_s10, 0 }
   0xa   : > { %s2851_s15 = scalar_select %p22_p1, %s2775_s8, %s24_s13  }
   0xb   : > { %p2853_p5 = por %p32_p2, %p31_p0  ;;  %p2857_p6 = por %p38_p4, %p37_p3 }
   0xc   : > { %p61_p7 = scmp.eq.s32.totalorder %s2835_s10, 3  ;;  %p67_p8 = scmp.eq.s32.totalorder %s2604_s11, 3 }
   0xd   : > { %s4003_s17 = scalar_select %p2857_p6, 1, 0 }
   0xe   : > { %p2632_p9 = scmp.lt.s32.totalorder %s2779_s9, 4  ;;  %p2863_p10 = por %p61_p7, %p31_p0 }
   0xf   : > { %p2867_p11 = por %p67_p8, %p37_p3  ;;  %s87_s20 = sand.u32 1, %s2775_s8  }
  0x10   : > { %s4004_s18 = scalar_select %p2863_p10, 1, 0 }
  0x11   : > { %s4005_s19 = scalar_select %p2867_p11, 1, 0 }
  0x12   : > { %s2618_s21 = sshll.u32 %s2779_s9, 9  ;;  %s2607_s22 = sshll.u32 %s87_s20, 5 }
  0x13   : > { %s2876_s25 = scalar_lea.hbm %s3972_s0, %s2618_s21  ;;  %s91_s26 = scalar_lea.vmem [#allocation2], %s2607_s22 }
  0x14   : > { %s98_s27 = sshll.u32 %s91_s26, 4  ;;  %p2880_p12 = pnand %p2632_p9, %p2853_p5  ;;  %s2884_s27 = int_to_ptr.vmem [resolvable:$true] %s98_s27 }
  0x15   : > { %s2886_s29 = scalar_lea.sflag [#allocation3], %s87_s20  ;;  %s2687_s30 = scalar_lea.hbm %s2876_s25, 512 }
  0x16   : > { %p2688_p13 = scmp.ne.s32.totalorder %s2876_s25, %s2687_s30  ;;  %p2689_p0 = pneg %p2880_p12 }
  0x17   : > { %s2692_s4 = scalar_lea.hbm %s3972_s0, 2048  ;;  %p2693_p3 = scmp.lt.s32.totalorder %s2876_s25, %s3972_s0 }
  0x18   : > { %p2690_p1 = pnand %p2689_p0, %p2688_p13  ;;  %p2694_p4 = scmp.lt.s32.totalorder %s2692_s4, %s2687_s30 }
  0x1a   : > { %p2691_p2 = pneg %p2690_p1  ;;  %p2695_p5 = por %p2694_p4, %p2693_p3 }
  0x1c   : > { %p2696_p7 = pnand %p2695_p5, %p2691_p2 }
  0x1e   : > { %2699 = shalt.err (!%p2696_p7)
}
  0x1f   : > { %s2700_s13 = scalar_lea.vmem %s2884_s27, 512  ;;  %s2781_s14 = smov [#allocation2]  }
  0x20   : > { %p2701_p8 = scmp.ne.s32.totalorder %s2884_s27, %s2700_s13  ;;  %s2705_s16 = sshll.u32 %s2781_s14, 4  ;;  %s2706_s16 = int_to_ptr.vmem [resolvable:$false] %s2705_s16 }
  0x21   : > { %s2707_s20 = scalar_lea.vmem %s2706_s16, 1024  ;;  %p2708_p1 = scmp.lt.s32.totalorder %s2884_s27, %s2706_s16 }
  0x22   : > { %p2703_p9 = pnand %p2701_p8, %p2689_p0  ;;  %p2709_p11 = scmp.lt.s32.totalorder %s2707_s20, %s2700_s13 }
  0x24   : > { %p2704_p13 = pneg %p2703_p9  ;;  %p2710_p10 = por %p2709_p11, %p2708_p1 }
  0x26   : > { %p2711_p6 = pnand %p2710_p10, %p2704_p13 }
  0x28   : > { %2714 = shalt.err (!%p2711_p6)
}
  0x29   : > { %s2782_s21 = smov 128   ;;  %s2783_s22 = smov 8  }
  0x2a   : > { %2627 = dma.hbm_to_vmem [thread:$0]  (!%p2880_p12), %s2876_s25, 512, %s2884_s27, %s2886_s29, %s2782_s21, %s2782_s21, %s2783_s22  }
  0x2b   : > { %p2610_p0 = scmp.ge.s32.totalorder %s2779_s9, 1  ;;  %p106_p2 = scmp.lt.s32.totalorder %s2779_s9, 5 }
  0x2d   : > { %p107_p3 = pnand %p2610_p0, %p106_p2 }
  0x2f   : > { %110 = sbr.rel (%p107_p3) target bundleno = 558 (0x22e), region = 24 }
  0x34   : > { %s2910_s23 = sand.u32 1, %s2771_s7   ;;  %p4007_p6 = scmp.ne.s32.totalorder %s4003_s17, 0 }
  0x35   : > { %s2611_s24 = sshll.u32 %s2910_s23, 5  ;;  %s113_s26 = scalar_lea.sflag [#allocation3], %s2910_s23 }
  0x36   : > { %s2914_s30 = scalar_lea.vmem [#allocation2], %s2611_s24 }
  0x37   : > { %2758 = dma.done.wait (%p4007_p6), %s113_s26, 512  }
  0x38   : > { %2760 = vsyncadd (%p4007_p6), %s113_s26, 4294966784  ;;  %v3976_v0 = vlaneseq  ;;  %v137_v4 = vld [vmem:[%s2914_s30] sm:$0xff]  ;;  %v138_v19 = vld [vmem:[%s2914_s30 + $0x8] sm:$0xff]  ;;  %v2784_v48 = vmov 1983009808   ;;  %s2786_s17 = smov 2  }
  0x39   : > { %v139_v28 = vld [vmem:[%s2914_s30 + $0x10] sm:$0xff]  ;;  %v140_v36 = vld [vmem:[%s2914_s30 + $0x18] sm:$0xff]  ;;  %v496_v49 = vunpack.c.l.s4 %v2784_v48  ;;  %s2787_s25 = smov 4   ;;  %s2788_s27 = smov 6   ;;  %vm1821_vm0 = vcmask 15360   ;;  %vm1826_vm1 = vcmask 31744  }
  0x3a   : > { %v2921_v1 = vshrl.u32 %v3976_v0, 7  ;;  %s2789_s28 = smov 8   ;;  %s2790_s29 = smov 10   ;;  %vm1831_vm2 = vcmask 48128   ;;  %vm1836_vm3 = vcmask 64512   ;;  %vm1841_vm4 = vcmask 80896  }
  0x3b   : > { %v497_v52 = vunpack.c.0.s8 %v496_v49  ;;  %s2791_s2 = smov 12   ;;  %s2792_s3 = smov 14   ;;  %vm1846_vm5 = vcmask 97280   ;;  %vm1851_vm6 = vcmask 113664   ;;  %vm1856_vm7 = vcmask 130048  }
  0x3c   : > { %4008 = vst [vmem:[#allocation8_spill] sm:$0xff] %v2921_v1  ;;  %v2924_v2 = vsub.s32 0, %v2921_v1  ;;  %v2927_v3 = vsub.s32 1, %v2921_v1  ;;  %v2933_v7 = vsub.s32 2, %v2921_v1  ;;  %v2937_v9 = vsub.s32 3, %v2921_v1  ;;  %s2793_s4 = smov 16  }
  0x3d   : > { %v2941_v11 = vsub.s32 4, %v2921_v1  ;;  %v2945_v13 = vsub.s32 5, %v2921_v1  ;;  %v2949_v15 = vsub.s32 6, %v2921_v1  ;;  %v2953_v17 = vsub.s32 7, %v2921_v1  ;;  %s2794_s5 = smov 18   ;;  %s2795_s11 = smov 20  }
  0x3e   : > { %4009 = vst [vmem:[#allocation9_spill] sm:$0xff] %v2924_v2  ;;  %v155_v5 = vrot.slane %v137_v4, %v2927_v3  ;;  %v144_v6 = vrot.slane %v137_v4, %v2924_v2  ;;  %v166_v8 = vrot.slane %v137_v4, %v2933_v7  ;;  %v177_v10 = vrot.slane %v137_v4, %v2937_v9  ;;  %s2796_s13 = smov 22   ;;  %s2797_s14 = smov 24  }
  0x3f   : > { %v188_v12 = vrot.slane %v137_v4, %v2941_v11  ;;  %v199_v14 = vrot.slane %v137_v4, %v2945_v13  ;;  %v210_v16 = vrot.slane %v137_v4, %v2949_v15  ;;  %v221_v18 = vrot.slane %v137_v4, %v2953_v17  ;;  %s2798_s16 = smov 26   ;;  %s2799_s20 = smov 28  }
  0x40   : > { %157 = vbcast.lane.b32.xlu1 %v155_v5, 256  ;;  %146 = vbcast.lane.b32.xlu0 %v144_v6, 256  ;;  %v232_v20 = vrot.slane %v138_v19, %v2924_v2  ;;  %v243_v21 = vrot.slane %v138_v19, %v2927_v3  ;;  %v254_v22 = vrot.slane %v138_v19, %v2933_v7  ;;  %s2800_s21 = smov 30   ;;  %vm1861_vm8 = vcmask 146432   ;;  %s2612_s22 = sshll.u32 %s2910_s23, 6 }
  0x41   : > { %v265_v23 = vrot.slane %v138_v19, %v2937_v9  ;;  %v276_v24 = vrot.slane %v138_v19, %v2941_v11  ;;  %v287_v25 = vrot.slane %v138_v19, %v2945_v13  ;;  %v298_v26 = vrot.slane %v138_v19, %v2949_v15  ;;  %s3827_s24 = scalar_lea.vmem [#allocation5], %s2612_s22  ;;  %s2619_s26 = sshll.u32 %s2835_s10, 10 }
  0x42   : > { %v309_v27 = vrot.slane %v138_v19, %v2953_v17  ;;  %v320_v29 = vrot.slane %v139_v28, %v2924_v2  ;;  %v331_v30 = vrot.slane %v139_v28, %v2927_v3  ;;  %v342_v31 = vrot.slane %v139_v28, %v2933_v7  ;;  %s2531_s30 = sshll.u32 %s3827_s24, 4  ;;  %p4076_p11 = scmp.ne.s32.totalorder %s4004_s18, 0  ;;  %s3925_s30 = int_to_ptr.vmem [resolvable:$true] %s2531_s30 }
  0x43   : > { %v353_v32 = vrot.slane %v139_v28, %v2937_v9  ;;  %v364_v33 = vrot.slane %v139_v28, %v2941_v11  ;;  %v386_v34 = vrot.slane %v139_v28, %v2949_v15  ;;  %v375_v35 = vrot.slane %v139_v28, %v2945_v13 }
  0x44   : > { %161 = vbcast.lane.b32.xlu1 %v155_v5, 264  ;;  %150 = vbcast.lane.b32.xlu0 %v144_v6, 264  ;;  %v408_v37 = vrot.slane %v140_v36, %v2924_v2  ;;  %v397_v38 = vrot.slane %v139_v28, %v2953_v17  ;;  %v430_v39 = vrot.slane %v140_v36, %v2933_v7  ;;  %v2785_v6 = vmov 1934713408  }
  0x45   : > { %v419_v40 = vrot.slane %v140_v36, %v2927_v3  ;;  %v452_v41 = vrot.slane %v140_v36, %v2941_v11  ;;  %v441_v42 = vrot.slane %v140_v36, %v2937_v9  ;;  %v474_v43 = vrot.slane %v140_v36, %v2949_v15 }
  0x46   : > { %v463_v44 = vrot.slane %v140_v36, %v2945_v13  ;;  %v485_v45 = vrot.slane %v140_v36, %v2953_v17  ;;  %v2996_v55 = vsub.s32 %v497_v52, %v2921_v1  ;;  %v560_v7 = vunpack.c.l.s4 %v2785_v6 }
  0x47   : > { %vm1866_vm9 = vcmask 162816   ;;  %vm1871_vm10 = vcmask 179200   ;;  %vm1876_vm11 = vcmask 195584   ;;  %vm1881_vm12 = vcmask 211968  }
  0x48   : > { %172 = vbcast.lane.b32.xlu1 %v166_v8, 264  ;;  %168 = vbcast.lane.b32.xlu0 %v166_v8, 256  ;;  %vm1886_vm13 = vcmask 228352   ;;  %vm1891_vm14 = vcmask 244736  }
  0x4c   : > { %183 = vbcast.lane.b32.xlu1 %v177_v10, 264  ;;  %179 = vbcast.lane.b32.xlu0 %v177_v10, 256  ;;  %v561_v10 = vunpack.c.0.s8 %v560_v7 }
  0x50   : > { %194 = vbcast.lane.b32.xlu1 %v188_v12, 264  ;;  %190 = vbcast.lane.b32.xlu0 %v188_v12, 256 }
  0x54   : > { %205 = vbcast.lane.b32.xlu1 %v199_v14, 264  ;;  %201 = vbcast.lane.b32.xlu0 %v199_v14, 256 }
  0x58   : > { %216 = vbcast.lane.b32.xlu1 %v210_v16, 264  ;;  %212 = vbcast.lane.b32.xlu0 %v210_v16, 256  ;;  %v3030_v16 = vsub.s32 %v561_v10, %v2921_v1 }
  0x5c   : > { %227 = vbcast.lane.b32.xlu1 %v221_v18, 264  ;;  %223 = vbcast.lane.b32.xlu0 %v221_v18, 256 }
  0x60   : > { %238 = vbcast.lane.b32.xlu1 %v232_v20, 264  ;;  %234 = vbcast.lane.b32.xlu0 %v232_v20, 256 }
  0x64   : > { %249 = vbcast.lane.b32.xlu1 %v243_v21, 264  ;;  %245 = vbcast.lane.b32.xlu0 %v243_v21, 256 }
  0x68   : > { %260 = vbcast.lane.b32.xlu1 %v254_v22, 264  ;;  %256 = vbcast.lane.b32.xlu0 %v254_v22, 256 }
  0x6c   : > { %271 = vbcast.lane.b32.xlu1 %v265_v23, 264  ;;  %267 = vbcast.lane.b32.xlu0 %v265_v23, 256 }
  0x70   : > { %282 = vbcast.lane.b32.xlu1 %v276_v24, 264  ;;  %278 = vbcast.lane.b32.xlu0 %v276_v24, 256 }
  0x74   : > { %293 = vbcast.lane.b32.xlu1 %v287_v25, 264  ;;  %289 = vbcast.lane.b32.xlu0 %v287_v25, 256 }
  0x78   : > { %304 = vbcast.lane.b32.xlu1 %v298_v26, 264  ;;  %300 = vbcast.lane.b32.xlu0 %v298_v26, 256 }
  0x7c   : > { %315 = vbcast.lane.b32.xlu1 %v309_v27, 264  ;;  %311 = vbcast.lane.b32.xlu0 %v309_v27, 256 }
  0x80   : > { %326 = vbcast.lane.b32.xlu1 %v320_v29, 264  ;;  %322 = vbcast.lane.b32.xlu0 %v320_v29, 256 }
  0x84   : > { %337 = vbcast.lane.b32.xlu1 %v331_v30, 264  ;;  %333 = vbcast.lane.b32.xlu0 %v331_v30, 256 }
  0x88   : > { %348 = vbcast.lane.b32.xlu1 %v342_v31, 264  ;;  %344 = vbcast.lane.b32.xlu0 %v342_v31, 256 }
  0x8c   : > { %359 = vbcast.lane.b32.xlu1 %v353_v32, 264  ;;  %355 = vbcast.lane.b32.xlu0 %v353_v32, 256 }
  0x90   : > { %370 = vbcast.lane.b32.xlu1 %v364_v33, 264  ;;  %366 = vbcast.lane.b32.xlu0 %v364_v33, 256 }
  0x94   : > { %388 = vbcast.lane.b32.xlu1 %v386_v34, 256  ;;  %377 = vbcast.lane.b32.xlu0 %v375_v35, 256 }
  0x98   : > { %410 = vbcast.lane.b32.xlu1 %v408_v37, 256  ;;  %399 = vbcast.lane.b32.xlu0 %v397_v38, 256 }
  0x9c   : > { %432 = vbcast.lane.b32.xlu1 %v430_v39, 256  ;;  %421 = vbcast.lane.b32.xlu0 %v419_v40, 256 }
  0xa0   : > { %454 = vbcast.lane.b32.xlu1 %v452_v41, 256  ;;  %443 = vbcast.lane.b32.xlu0 %v441_v42, 256 }
  0xa4   : > { %476 = vbcast.lane.b32.xlu1 %v474_v43, 256  ;;  %465 = vbcast.lane.b32.xlu0 %v463_v44, 256 }
  0xa8   : > { %381 = vbcast.lane.b32.xlu1 %v375_v35, 264  ;;  %487 = vbcast.lane.b32.xlu0 %v485_v45, 256 }
  0xac   : > { %403 = vbcast.lane.b32.xlu1 %v397_v38, 264  ;;  %392 = vbcast.lane.b32.xlu0 %v386_v34, 264 }
  0xb0   : > { %425 = vbcast.lane.b32.xlu1 %v419_v40, 264  ;;  %414 = vbcast.lane.b32.xlu0 %v408_v37, 264 }
  0xb2   : > { %v2983_v46 = vpop.permute.xlu1 %157  ;;  %v2985_v47 = vpop.permute.xlu0 %146 }
  0xb4   : > { %447 = vbcast.lane.b32.xlu1 %v441_v42, 264  ;;  %436 = vbcast.lane.b32.xlu0 %v430_v39, 264 }
  0xb6   : > { %v2987_v50 = vpop.permute.xlu1 %161  ;;  %v2989_v51 = vpop.permute.xlu0 %150 }
  0xb8   : > { %469 = vbcast.lane.b32.xlu1 %v463_v44, 264  ;;  %458 = vbcast.lane.b32.xlu0 %v452_v41, 264 }
  0xba   : > { %v2991_v53 = vpop.permute.xlu1 %172  ;;  %v2993_v54 = vpop.permute.xlu0 %168 }
  0xbb   : > { %v493_v56 = vcombine.low %v2985_v47, %v2993_v54 }
  0xbc   : > { %491 = vbcast.lane.b32.xlu1 %v485_v45, 264  ;;  %480 = vbcast.lane.b32.xlu0 %v474_v43, 264 }
  0xbd   : > { %v501_v61 = vrot.slane %v493_v56, %v2996_v55 }
  0xbe   : > { %v3000_v57 = vpop.permute.xlu1 %183  ;;  %v3002_v58 = vpop.permute.xlu0 %179 }
  0xbf   : > { %v509_v59 = vcombine.low %v2983_v46, %v3002_v58 }
  0xc1   : > { %v517_v60 = vrot.slane %v509_v59, %v2996_v55 }
  0xc2   : > { %v3008_v62 = vpop.permute.xlu1 %194  ;;  %v3010_v63 = vpop.permute.xlu0 %190 }
  0xc3   : > { %v558_v3 = vcombine.high %v501_v61, %v517_v60  ;;  %v557_v17 = vcombine.low %v501_v61, %v517_v60 }
  0xc5   : > { %v3042_v25 = vrot.slane %v557_v17, %v3030_v16  ;;  %v3048_v27 = vrot.slane %v558_v3, %v3030_v16 }
  0xc6   : > { %v3012_v4 = vpop.permute.xlu1 %205  ;;  %v3014_v5 = vpop.permute.xlu0 %201 }
  0xc7   : > { %4012 = vst [vmem:[#allocation12_spill] sm:$0xff] %v3042_v25 }
  0xca   : > { %v3016_v8 = vpop.permute.xlu1 %216  ;;  %v3018_v9 = vpop.permute.xlu0 %212 }
  0xcb   : > { %v525_v11 = vcombine.low %v3010_v63, %v3018_v9 }
  0xcd   : > { %v533_v18 = vrot.slane %v525_v11, %v2996_v55 }
  0xce   : > { %v3022_v12 = vpop.permute.xlu1 %227  ;;  %v3024_v13 = vpop.permute.xlu0 %223 }
  0xcf   : > { %v541_v14 = vcombine.low %v3014_v5, %v3024_v13 }
  0xd1   : > { %v549_v15 = vrot.slane %v541_v14, %v2996_v55 }
  0xd2   : > { %v3033_v19 = vpop.permute.xlu1 %238  ;;  %v3035_v20 = vpop.permute.xlu0 %234 }
  0xd3   : > { %4010 = vst [vmem:[#allocation10_spill] sm:$0xff] %v3033_v19  ;;  %v589_v21 = vcombine.low %v533_v18, %v549_v15  ;;  %v590_v22 = vcombine.high %v533_v18, %v549_v15 }
  0xd5   : > { %v3045_v26 = vrot.slane %v589_v21, %v3030_v16  ;;  %v3051_v28 = vrot.slane %v590_v22, %v3030_v16 }
  0xd6   : > { %v3037_v23 = vpop.permute.xlu1 %249  ;;  %v3039_v24 = vpop.permute.xlu0 %245 }
  0xd7   : > { %4011 = vst [vmem:[#allocation11_spill] sm:$0xff] %v3037_v23  ;;  %4013 = vst [vmem:[#allocation13_spill] sm:$0xff] %v3045_v26  ;;  %v622_v29 = vcombine.high %v3042_v25, %v3045_v26 }
  0xd9   : > { %1585 = vrot.lane.b32.xlu0 %v622_v29, %s2786_s17 }
  0xda   : > { %v3062_v33 = vpop.permute.xlu1 %260  ;;  %v3064_v34 = vpop.permute.xlu0 %256 }
  0xdb   : > { %4014 = vst [vmem:[#allocation14_spill] sm:$0xff] %v3062_v33  ;;  %v629_v44 = vcombine.low %v3035_v20, %v3064_v34 }
  0xdd   : > { %v3078_v10 = vrot.slane %v629_v44, %v2996_v55 }
  0xde   : > { %v3066_v35 = vpop.permute.xlu1 %271  ;;  %v3068_v36 = vpop.permute.xlu0 %267 }
  0xdf   : > { %v645_v41 = vcombine.low %v3039_v24, %v3068_v36 }
  0xe1   : > { %v3075_v49 = vrot.slane %v645_v41, %v2996_v55 }
  0xe2   : > { %v283_v37 = vpop.permute.xlu1 %282  ;;  %v279_v38 = vpop.permute.xlu0 %278 }
  0xe3   : > { %v693_v22 = vcombine.low %v3078_v10, %v3075_v49 }
  0xe6   : > { %v294_v39 = vpop.permute.xlu1 %293  ;;  %v290_v40 = vpop.permute.xlu0 %289 }
  0xea   : > { %v305_v42 = vpop.permute.xlu1 %304  ;;  %v301_v43 = vpop.permute.xlu0 %300 }
  0xeb   : > { %v1205_v45 = vcombine.low %v283_v37, %v305_v42  ;;  %v1206_v48 = vcombine.high %v283_v37, %v305_v42  ;;  %v661_v52 = vcombine.low %v279_v38, %v301_v43  ;;  %v662_v56 = vcombine.high %v279_v38, %v301_v43 }
  0xed   : > { %v3081_v11 = vrot.slane %v1205_v45, %v2996_v55  ;;  %v3084_v14 = vrot.slane %v1206_v48, %v2996_v55  ;;  %v3101_v29 = vrot.slane %v661_v52, %v2996_v55  ;;  %v3104_v37 = vrot.slane %v662_v56, %v2996_v55 }
  0xee   : > { %v316_v59 = vpop.permute.xlu1 %315  ;;  %v312_v60 = vpop.permute.xlu0 %311 }
  0xef   : > { %v1221_v61 = vcombine.low %v294_v39, %v316_v59  ;;  %v1222_v3 = vcombine.high %v294_v39, %v316_v59  ;;  %v677_v6 = vcombine.low %v290_v40, %v312_v60  ;;  %v678_v7 = vcombine.high %v290_v40, %v312_v60  ;;  %4015 = vst [vmem:[#allocation15_spill] sm:$0xff] %v3081_v11 }
  0xf0   : > { %4016 = vst [vmem:[#allocation16_spill] sm:$0xff] %v3084_v14  ;;  %v3125_v59 = vrot.slane %v693_v22, %v3030_v16 }
  0xf1   : > { %v3087_v15 = vrot.slane %v1221_v61, %v2996_v55  ;;  %v3090_v17 = vrot.slane %v1222_v3, %v2996_v55  ;;  %v3093_v18 = vrot.slane %v677_v6, %v2996_v55  ;;  %v3096_v21 = vrot.slane %v678_v7, %v2996_v55 }
  0xf2   : > { %v327_v38 = vpop.permute.xlu1 %326  ;;  %v3106_v39 = vpop.permute.xlu0 %322  ;;  %4019 = vst [vmem:[#allocation19_spill] sm:$0xff] %v3125_v59 }
  0xf3   : > { %4017 = vst [vmem:[#allocation17_spill] sm:$0xff] %v3087_v15  ;;  %4018 = vst [vmem:[#allocation18_spill] sm:$0xff] %v3090_v17  ;;  %v725_v44 = vcombine.low %v3101_v29, %v3093_v18 }
  0xf5   : > { %v3128_v60 = vrot.slane %v725_v44, %v3030_v16 }
  0xf6   : > { %v338_v52 = vpop.permute.xlu1 %337  ;;  %v3122_v56 = vpop.permute.xlu0 %333 }
  0xf7   : > { %4020 = vst [vmem:[#allocation20_spill] sm:$0xff] %v3128_v60  ;;  %v758_v61 = vcombine.high %v3125_v59, %v3128_v60 }
  0xf9   : > { %1587 = vrot.lane.b32.xlu1 %v758_v61, %s2786_s17 }
  0xfa   : > { %v349_v6 = vpop.permute.xlu1 %348  ;;  %v3135_v7 = vpop.permute.xlu0 %344 }
  0xfb   : > { %v1309_v0 = vcombine.low %v327_v38, %v349_v6  ;;  %v1310_v43 = vcombine.high %v327_v38, %v349_v6  ;;  %v765_v45 = vcombine.low %v3106_v39, %v3135_v7 }
  0xfd   : > { %v3140_v44 = vrot.slane %v1309_v0, %v2996_v55  ;;  %v3143_v32 = vrot.slane %v1310_v43, %v2996_v55  ;;  %v773_v30 = vrot.slane %v765_v45, %v2996_v55 }
  0xfe   : > { %v360_v42 = vpop.permute.xlu1 %359  ;;  %v3137_v41 = vpop.permute.xlu0 %355 }
  0xff   : > { %v1325_v22 = vcombine.low %v338_v52, %v360_v42  ;;  %v1326_v40 = vcombine.high %v338_v52, %v360_v42  ;;  %4021 = vst [vmem:[#allocation21_spill] sm:$0xff] %v3140_v44 }
 0x101   : > { %v3146_v3 = vrot.slane %v1325_v22, %v2996_v55  ;;  %v3149_v61 = vrot.slane %v1326_v40, %v2996_v55  ;;  %v781_v40 = vcombine.low %v3122_v56, %v3137_v41 }
 0x102   : > { %v3151_v48 = vpop.permute.xlu1 %370  ;;  %v3153_v38 = vpop.permute.xlu0 %366 }
 0x103   : > { %4022 = vst [vmem:[#allocation22_spill] sm:$0xff] %v3146_v3  ;;  %v789_v6 = vrot.slane %v781_v40, %v2996_v55 }
 0x105   : > { %v829_v2 = vcombine.low %v773_v30, %v789_v6  ;;  %v830_v25 = vcombine.high %v773_v30, %v789_v6  ;;  %v494_v30 = vcombine.high %v2985_v47, %v2993_v54 }
 0x106   : > { %v3165_v52 = vpop.permute.xlu1 %388  ;;  %v378_v22 = vpop.permute.xlu0 %377 }
 0x107   : > { %v797_v0 = vcombine.low %v3153_v38, %v3165_v52  ;;  %v3182_v40 = vrot.slane %v829_v2, %v3030_v16 }
 0x109   : > { %v805_v1 = vrot.slane %v797_v0, %v2996_v55  ;;  %4023 = vst [vmem:[#allocation23_spill] sm:$0xff] %v3182_v40 }
 0x10a   : > { %v3172_v31 = vpop.permute.xlu1 %410  ;;  %v400_v42 = vpop.permute.xlu0 %399 }
 0x10b   : > { %v813_v43 = vcombine.low %v378_v22, %v400_v42  ;;  %v814_v47 = vcombine.high %v378_v22, %v400_v42  ;;  %v798_v42 = vcombine.high %v3153_v38, %v3165_v52  ;;  %v726_v52 = vcombine.high %v3101_v29, %v3093_v18 }
 0x10c   : > { %v4026_v18 = vcombine.high %v3048_v27, %v3051_v28 }
 0x10d   : > { %v821_v17 = vrot.slane %v813_v43, %v2996_v55  ;;  %v542_v43 = vcombine.high %v3014_v5, %v3024_v13 }
 0x10e   : > { %v3177_v14 = vpop.permute.xlu1 %432  ;;  %v3179_v60 = vpop.permute.xlu0 %421 }
 0x10f   : > { %v861_v59 = vcombine.low %v805_v1, %v821_v17  ;;  %v862_v26 = vcombine.high %v805_v1, %v821_v17  ;;  %v526_v17 = vcombine.high %v3010_v63, %v3018_v9  ;;  %v901_v5 = vcombine.low %v3172_v31, %v3177_v14 }
 0x110   : > { %v3214_v6 = vrot.slane %v542_v43, %v2996_v55  ;;  %v4025_v63 = vcombine.low %v3048_v27, %v3051_v28  ;;  %v844_v9 = vrot.slane %v830_v25, %v3030_v16  ;;  %v782_v25 = vcombine.high %v3122_v56, %v3137_v41 }
 0x111   : > { %v3185_v15 = vrot.slane %v861_v59, %v3030_v16  ;;  %v510_v59 = vcombine.high %v2983_v46, %v3002_v58  ;;  %v876_v13 = vrot.slane %v862_v26, %v3030_v16  ;;  %v909_v43 = vrot.slane %v901_v5, %v2996_v55 }
 0x112   : > { %v3187_v11 = vpop.permute.xlu1 %454  ;;  %v3189_v45 = vpop.permute.xlu0 %443 }
 0x113   : > { %4024 = vst [vmem:[#allocation24_spill] sm:$0xff] %v3185_v15  ;;  %v894_v0 = vcombine.high %v3182_v40, %v3185_v15  ;;  %v917_v19 = vcombine.low %v3179_v60, %v3189_v45  ;;  %v3227_v26 = vrot.slane %v510_v59, %v2996_v55  ;;  %v895_v15 = vcombine.low %v844_v9, %v876_v13 }
 0x114   : > { %v3255_v40 = vrot.slane %v814_v47, %v2996_v55  ;;  %v694_v47 = vcombine.high %v3078_v10, %v3075_v49  ;;  %v896_v28 = vcombine.high %v844_v9, %v876_v13 }
 0x115   : > { %1589 = vrot.lane.b32.xlu0 %v894_v0, %s2786_s17  ;;  %v3217_v46 = vrot.slane %v917_v19, %v2996_v55  ;;  %v3234_v19 = vrot.slane %v526_v17, %v2996_v55 }
 0x116   : > { %v3202_v33 = vpop.permute.xlu1 %476  ;;  %v3204_v1 = vpop.permute.xlu0 %465  ;;  %v708_v13 = vrot.slane %v694_v47, %v3030_v16 }
 0x117   : > { %v933_v58 = vcombine.low %v3187_v11, %v3202_v33  ;;  %v605_v22 = vcombine.low %v3234_v19, %v3214_v6  ;;  %v965_v59 = vcombine.low %v909_v43, %v3217_v46  ;;  %v966_v23 = vcombine.high %v909_v43, %v3217_v46 }
 0x118   : > { %v4027_v43 = vcombine.low %v3143_v32, %v3149_v61 }
 0x119   : > { %1601 = vrot.lane.b32.xlu0 %v4025_v63, %s2787_s25  ;;  %v3240_v63 = vrot.slane %v494_v30, %v2996_v55  ;;  %v941_v17 = vrot.slane %v933_v58, %v2996_v55  ;;  %v766_v30 = vcombine.high %v3106_v39, %v3135_v7  ;;  %v3282_v29 = vrot.slane %v965_v59, %v3030_v16 }
 0x11a   : > { %v3229_v54 = vpop.permute.xlu1 %381  ;;  %v3231_v0 = vpop.permute.xlu0 %487 }
 0x11b   : > { %v949_v2 = vcombine.low %v3204_v1, %v3231_v0  ;;  %v573_v38 = vcombine.low %v3240_v63, %v3227_v26  ;;  %v3289_v3 = vrot.slane %v766_v30, %v2996_v55 }
 0x11d   : > { %v957_v5 = vrot.slane %v949_v2, %v2996_v55  ;;  %1605 = vrot.lane.b32.xlu0 %v895_v15, %s2787_s25  ;;  %v3266_v2 = vrot.slane %v782_v25, %v2996_v55  ;;  %v3269_v15 = vrot.slane %v798_v42, %v2996_v55  ;;  %v613_v42 = vrot.slane %v605_v22, %v3030_v16 }
 0x11e   : > { %v3257_v41 = vpop.permute.xlu1 %403  ;;  %v3259_v56 = vpop.permute.xlu0 %392 }
 0x11f   : > { %v997_v58 = vcombine.low %v941_v17, %v957_v5  ;;  %v1358_v39 = vcombine.high %v3229_v54, %v3257_v41  ;;  %v1342_v7 = vcombine.high %v3151_v48, %v3259_v56  ;;  %v877_v49 = vcombine.low %v3269_v15, %v3255_v40 }
 0x120   : > { %v998_v27 = vcombine.high %v941_v17, %v957_v5  ;;  %v845_v22 = vcombine.low %v3289_v3, %v3266_v2 }
 0x121   : > { %1617 = vrot.lane.b32.xlu0 %v4026_v18, %s2788_s27  ;;  %v3285_v25 = vrot.slane %v997_v58, %v3030_v16  ;;  %v1372_v10 = vrot.slane %v1358_v39, %v2996_v55  ;;  %v1356_v44 = vrot.slane %v1342_v7, %v2996_v55  ;;  %v740_v58 = vrot.slane %v726_v52, %v3030_v16 }
 0x122   : > { %v581_v39 = vrot.slane %v573_v38, %v3030_v16  ;;  %v885_v5 = vrot.slane %v877_v49, %v3030_v16  ;;  %v1012_v46 = vrot.slane %v998_v27, %v3030_v16  ;;  %v3317_v7 = vrot.slane %v4027_v43, %v3030_v16 }
 0x123   : > { %v1030_v59 = vcombine.high %v3282_v29, %v3285_v25  ;;  %v1421_v18 = vcombine.low %v1356_v44, %v1372_v10  ;;  %v1422_v30 = vcombine.high %v1356_v44, %v1372_v10  ;;  %v759_v44 = vcombine.low %v708_v13, %v740_v58 }
 0x124   : > { %v625_v52 = vcombine.low %v581_v39, %v613_v42  ;;  %v4028_v38 = vcombine.high %v3143_v32, %v3149_v61  ;;  %v853_v10 = vrot.slane %v845_v22, %v3030_v16  ;;  %v630_v49 = vcombine.high %v3035_v20, %v3064_v34 }
 0x125   : > { %1621 = vrot.lane.b32.xlu0 %v896_v28, %s2788_s27  ;;  %1591 = vrot.lane.b32.xlu1 %v1030_v59, %s2786_s17  ;;  %v3306_v9 = vrot.slane %v1421_v18, %v3030_v16  ;;  %v3309_v17 = vrot.slane %v1422_v30, %v3030_v16  ;;  %v646_v27 = vcombine.high %v3039_v24, %v3068_v36 }
 0x126   : > { %v3323_v47 = vrot.slane %v4028_v38, %v3030_v16  ;;  %v980_v28 = vrot.slane %v966_v23, %v3030_v16  ;;  %v897_v59 = vcombine.low %v853_v10, %v885_v5  ;;  %v950_v24 = vcombine.high %v3204_v1, %v3231_v0  ;;  %v3389_v38 = vpop.permute.xlu0 %414 }
 0x127   : > { %v1441_v32 = vcombine.low %v3317_v7, %v3306_v9  ;;  %v3346_v22 = vrot.slane %v646_v27, %v2996_v55  ;;  %v918_v18 = vcombine.high %v3179_v60, %v3189_v45  ;;  %v934_v30 = vcombine.high %v3187_v11, %v3202_v33 }
 0x128   : > { %v1031_v34 = vcombine.low %v980_v28, %v1012_v46  ;;  %v606_v1 = vcombine.high %v3234_v19, %v3214_v6  ;;  %v626_v0 = vcombine.high %v581_v39, %v613_v42  ;;  %v3362_v43 = vrot.slane %v950_v24, %v2996_v55 }
 0x129   : > { %1633 = vrot.lane.b32.xlu0 %v625_v52, %s2789_s28  ;;  %1603 = vrot.lane.b32.xlu1 %v759_v44, %s2787_s25  ;;  %v3357_v52 = vrot.slane %v630_v49, %v2996_v55  ;;  %v902_v44 = vcombine.high %v3172_v31, %v3177_v14  ;;  %v760_v60 = vcombine.high %v708_v13, %v740_v58 }
 0x12a   : > { %v574_v33 = vcombine.high %v3240_v63, %v3227_v26  ;;  %v3369_v45 = vrot.slane %v918_v18, %v2996_v55  ;;  %v3372_v6 = vrot.slane %v934_v30, %v2996_v55  ;;  %v878_v31 = vcombine.high %v3269_v15, %v3255_v40 }
 0x12b   : > { %v709_v11 = vcombine.low %v3357_v52, %v3346_v22  ;;  %v620_v14 = vrot.slane %v606_v1, %v3030_v16  ;;  %v4029_v26 = vcombine.low %v3104_v37, %v3096_v21  ;;  %v3384_v63 = vrot.slane %v902_v44, %v2996_v55  ;;  %v3417_v1 = vpop.permute.xlu0 %436 }
 0x12c   : > { %v1013_v42 = vcombine.low %v3372_v6, %v3362_v43  ;;  %v898_v58 = vcombine.high %v853_v10, %v885_v5  ;;  %v1032_v39 = vcombine.high %v980_v28, %v1012_v46  ;;  %v588_v13 = vrot.slane %v574_v33, %v3030_v16  ;;  %v3400_v46 = vpop.permute.xlu1 %425 }
 0x12d   : > { %1637 = vrot.lane.b32.xlu0 %v897_v59, %s2789_s28  ;;  %1607 = vrot.lane.b32.xlu1 %v1031_v34, %s2787_s25  ;;  %v749_v19 = vrot.slane %v4029_v26, %v3030_v16  ;;  %v846_v40 = vcombine.high %v3289_v3, %v3266_v2  ;;  %v981_v15 = vcombine.low %v3384_v63, %v3369_v45  ;;  %s3923_s25 = scalar_lea.hbm %s3973_s1, %s2619_s26 }
 0x12e   : > { %v717_v49 = vrot.slane %v709_v11, %v3030_v16  ;;  %v1085_v5 = vcombine.low %v3012_v4, %v3022_v12  ;;  %v627_v10 = vcombine.low %v588_v13, %v620_v14  ;;  %v892_v28 = vrot.slane %v878_v31, %v3030_v16 }
 0x12f   : > { %v1021_v3 = vrot.slane %v1013_v42, %v3030_v16  ;;  %v1069_v2 = vcombine.low %v3008_v62, %v3016_v8  ;;  %v1053_v59 = vcombine.low %v2987_v50, %v3000_v57  ;;  %v860_v24 = vrot.slane %v846_v40, %v3030_v16 }
 0x130   : > { %v761_v27 = vcombine.low %v717_v49, %v749_v19  ;;  %v989_v34 = vrot.slane %v981_v15, %v3030_v16  ;;  %v1037_v18 = vcombine.low %v2989_v51, %v2991_v53  ;;  %v3415_v30 = vrot.slane %v1085_v5, %v2996_v55  ;;  %v3426_v31 = vpop.permute.xlu1 %447 }
 0x131   : > { %1649 = vrot.lane.b32.xlu0 %v626_v0, %s2790_s29  ;;  %1619 = vrot.lane.b32.xlu1 %v760_v60, %s2788_s27  ;;  %v1357_v0 = vcombine.low %v3229_v54, %v3257_v41  ;;  %v1341_v44 = vcombine.low %v3151_v48, %v3259_v56  ;;  %v899_v60 = vcombine.low %v860_v24, %v892_v28 }
 0x132   : > { %v1033_v33 = vcombine.low %v989_v34, %v1021_v3  ;;  %v3424_v11 = vrot.slane %v1069_v2, %v2996_v55  ;;  %v3429_v26 = vrot.slane %v1053_v59, %v2996_v55  ;;  %v3434_v42 = vrot.slane %v1037_v18, %v2996_v55  ;;  %v4033_v18 = vld [vmem:[#allocation22_spill] sm:$0xff] }
 0x133   : > { %v3439_v54 = vrot.slane %v1357_v0, %v2996_v55  ;;  %v3442_v41 = vrot.slane %v1341_v44, %v2996_v55  ;;  %v628_v56 = vcombine.high %v588_v13, %v620_v14  ;;  %v710_v15 = vcombine.high %v3357_v52, %v3346_v22 }
 0x134   : > { %v1133_v48 = vcombine.low %v3424_v11, %v3415_v30  ;;  %v1101_v40 = vcombine.low %v3434_v42, %v3429_v26  ;;  %v1014_v5 = vcombine.high %v3372_v6, %v3362_v43  ;;  %v900_v13 = vcombine.high %v860_v24, %v892_v28 }
 0x135   : > { %1653 = vrot.lane.b32.xlu0 %v898_v58, %s2790_s29  ;;  %1623 = vrot.lane.b32.xlu1 %v1032_v39, %s2788_s27  ;;  %v762_v58 = vcombine.high %v717_v49, %v749_v19  ;;  %v3444_v39 = vpop.permute.xlu0 %458  ;;  %v1405_v19 = vcombine.low %v3442_v41, %v3439_v54  ;;  %v1034_v49 = vcombine.high %v989_v34, %v1021_v3  ;;  %v4032_v34 = vld [vmem:[#allocation21_spill] sm:$0xff]  ;;  %s2518_s27 = scalar_lea.sflag [#allocation4], %s2910_s23 }
 0x136   : > { %v1141_v14 = vrot.slane %v1133_v48, %v3030_v16  ;;  %v4030_v22 = vcombine.high %v3104_v37, %v3096_v21  ;;  %v1109_v43 = vrot.slane %v1101_v40, %v3030_v16  ;;  %v724_v6 = vrot.slane %v710_v15, %v3030_v16 }
 0x137   : > { %v1028_v28 = vrot.slane %v1014_v5, %v3030_v16  ;;  %v1413_v21 = vrot.slane %v1405_v19, %v3030_v16  ;;  %v4034_v0 = vcombine.low %v4032_v34, %v4033_v18  ;;  %v1445_v40 = vcombine.low %v3389_v38, %v3417_v1 }
 0x138   : > { %v756_v52 = vrot.slane %v4030_v22, %v3030_v16  ;;  %v1165_v3 = vcombine.low %v1109_v43, %v1141_v14  ;;  %v4037_v22 = vld [vmem:[#allocation12_spill] sm:$0xff]  ;;  %v1166_v20 = vcombine.high %v1109_v43, %v1141_v14  ;;  %v4041_v14 = vld [vmem:[#allocation17_spill] sm:$0xff] }
 0x139   : > { %1665 = vrot.lane.b32.xlu0 %v627_v10, %s2791_s2  ;;  %1635 = vrot.lane.b32.xlu1 %v761_v27, %s2789_s28  ;;  %v3454_v10 = vpop.permute.xlu1 %469  ;;  %v982_v27 = vcombine.high %v3384_v63, %v3369_v45  ;;  %v3469_v2 = vpop.permute.xlu0 %480  ;;  %v4031_v63 = vld [vmem:[#allocation11_spill] sm:$0xff]  ;;  %v1381_v44 = vrot.slane %v4034_v0, %v3030_v16  ;;  %v1134_v0 = vcombine.high %v3424_v11, %v3415_v30 }
 0x13a   : > { %v763_v59 = vcombine.low %v724_v6, %v756_v52  ;;  %v1189_v24 = vcombine.low %v4031_v63, %v3066_v35  ;;  %v1477_v5 = vcombine.low %v3444_v39, %v3469_v2  ;;  %v764_v36 = vcombine.high %v724_v6, %v756_v52  ;;  %v4040_v11 = vld [vmem:[#allocation15_spill] sm:$0xff] }
 0x13b   : > { %v996_v45 = vrot.slane %v982_v27, %v3030_v16  ;;  %v1437_v19 = vcombine.low %v1381_v44, %v1413_v21  ;;  %v4038_v27 = vld [vmem:[#allocation13_spill] sm:$0xff]  ;;  %v1453_v61 = vrot.slane %v1445_v40, %v2996_v55  ;;  %v1406_v30 = vcombine.high %v3442_v41, %v3439_v54 }
 0x13c   : > { %v4042_v52 = vcombine.low %v4040_v11, %v4041_v14  ;;  %v1148_v6 = vrot.slane %v1134_v0, %v3030_v16 }
 0x13d   : > { %1669 = vrot.lane.b32.xlu0 %v899_v60, %s2791_s2  ;;  %1639 = vrot.lane.b32.xlu1 %v1033_v33, %s2789_s28  ;;  %v3473_v37 = vpop.permute.xlu1 %491  ;;  %v4035_v60 = vld [vmem:[#allocation14_spill] sm:$0xff]  ;;  %v1420_v41 = vrot.slane %v1406_v30, %v3030_v16 }
 0x13e   : > { %v4036_v33 = vld [vmem:[#allocation10_spill] sm:$0xff]  ;;  %v1493_v15 = vcombine.low %v3454_v10, %v3473_v37  ;;  %v1277_v43 = vrot.slane %v4042_v52, %v3030_v16 }
 0x13f   : > { %v1173_v48 = vcombine.low %v4036_v33, %v4035_v60 }
 0x141   : > { %1681 = vrot.lane.b32.xlu0 %v628_v56, %s2792_s3  ;;  %1651 = vrot.lane.b32.xlu1 %v762_v58, %s2790_s29  ;;  %v1461_v56 = vcombine.low %v3400_v46, %v3426_v31  ;;  %v1035_v58 = vcombine.low %v996_v45, %v1028_v28  ;;  %v1181_v23 = vrot.slane %v1173_v48, %v2996_v55 }
 0x145   : > { %1685 = vrot.lane.b32.xlu0 %v900_v13, %s2792_s3  ;;  %1655 = vrot.lane.b32.xlu1 %v1034_v49, %s2790_s29  ;;  %v3495_v49 = vrot.slane %v1189_v24, %v2996_v55  ;;  %v1469_v24 = vrot.slane %v1461_v56, %v2996_v55  ;;  %s2715_s29 = scalar_lea.vmem %s3925_s30, 1024 }
 0x146   : > { %p2716_p10 = scmp.ne.s32.totalorder %s3925_s30, %s2715_s29 }
 0x147   : > { %v1509_v48 = vcombine.low %v1453_v61, %v1469_v24  ;;  %v1510_v52 = vcombine.high %v1453_v61, %v1469_v24  ;;  %v1190_v61 = vcombine.high %v4031_v63, %v3066_v35  ;;  %v1174_v24 = vcombine.high %v4036_v33, %v4035_v60 }
 0x148   : > { %v1478_v35 = vcombine.high %v3444_v39, %v3469_v2  ;;  %p2717_p12 = pnand %p2716_p10, %p4076_p11 }
 0x149   : > { %1697 = vrot.lane.b32.xlu0 %v1165_v3, %s2793_s4  ;;  %1667 = vrot.lane.b32.xlu1 %v763_v59, %s2791_s2  ;;  %v4039_v3 = vcombine.low %v4037_v22, %v4038_v27  ;;  %v1501_v22 = vrot.slane %v1493_v15, %v2996_v55 }
 0x14a   : > { %p2718_p4 = pneg %p2717_p12 }
 0x14b   : > { %v1586_v13 = vpop.permute.xlu0 %1585 }
 0x14c   : > { %v3501_v59 = vsel %vm1821_vm0, %v4039_v3, %v1586_v13  ;;  %v1485_v13 = vrot.slane %v1477_v5, %v2996_v55  ;;  %v1517_v5 = vrot.slane %v1509_v48, %v3030_v16 }
 0x14d   : > { %1671 = vrot.lane.b32.xlu1 %v1035_v58, %s2791_s2  ;;  %1701 = vrot.lane.b32.xlu0 %v1437_v19, %s2793_s4  ;;  %v1102_v58 = vcombine.high %v3434_v42, %v3429_v26  ;;  %v1237_v19 = vcombine.low %v1181_v23, %v3495_v49  ;;  %v1036_v26 = vcombine.high %v996_v45, %v1028_v28  ;;  %s2802_s2 = smov [#allocation5]  }
 0x14e   : > { %v1541_v56 = vcombine.low %v1485_v13, %v1501_v22  ;;  %v1438_v42 = vcombine.high %v1381_v44, %v1413_v21  ;;  %v1070_v21 = vcombine.high %v3008_v62, %v3016_v8  ;;  %v1054_v45 = vcombine.high %v2987_v50, %v3000_v57 }
 0x14f   : > { %v1116_v40 = vrot.slane %v1102_v58, %v3030_v16  ;;  %v4043_v44 = vcombine.high %v4032_v34, %v4033_v18  ;;  %v1542_v48 = vcombine.high %v1485_v13, %v1501_v22  ;;  %v1462_v22 = vcombine.high %v3400_v46, %v3426_v31 }
 0x150   : > { %v1549_v28 = vrot.slane %v1541_v56, %v3030_v16  ;;  %v1084_v8 = vrot.slane %v1070_v21, %v2996_v55  ;;  %v1068_v50 = vrot.slane %v1054_v45, %v2996_v55  ;;  %v1446_v13 = vcombine.high %v3389_v38, %v3417_v1 }
 0x151   : > { %1683 = vrot.lane.b32.xlu1 %v764_v36, %s2792_s3  ;;  %1713 = vrot.lane.b32.xlu0 %v1166_v20, %s2794_s5  ;;  %v1245_v20 = vrot.slane %v1237_v19, %v3030_v16  ;;  %v1086_v36 = vcombine.high %v3012_v4, %v3022_v12  ;;  %v1167_v54 = vcombine.low %v1116_v40, %v1148_v6 }
 0x152   : > { %v1388_v27 = vrot.slane %v4043_v44, %v3030_v16  ;;  %v1038_v12 = vcombine.high %v2989_v51, %v2991_v53  ;;  %v1573_v62 = vcombine.low %v1517_v5, %v1549_v28  ;;  %v1168_v18 = vcombine.high %v1116_v40, %v1148_v6 }
 0x153   : > { %v1301_v15 = vcombine.low %v1245_v20, %v1277_v43  ;;  %v1100_v4 = vrot.slane %v1086_v36, %v2996_v55  ;;  %v1302_v0 = vcombine.high %v1245_v20, %v1277_v43  ;;  %v1238_v19 = vcombine.high %v1181_v23, %v3495_v49  ;;  %v4045_v36 = vld [vmem:[#allocation19_spill] sm:$0xff] }
 0x154   : > { %v1439_v3 = vcombine.low %v1388_v27, %v1420_v41  ;;  %v1052_v34 = vrot.slane %v1038_v12, %v2996_v55  ;;  %v4044_v51 = vcombine.high %v4040_v11, %v4041_v14  ;;  %v1440_v56 = vcombine.high %v1388_v27, %v1420_v41 }
 0x155   : > { %1687 = vrot.lane.b32.xlu1 %v1036_v26, %s2792_s3  ;;  %1717 = vrot.lane.b32.xlu0 %v1438_v42, %s2794_s5  ;;  %v1149_v57 = vcombine.low %v1084_v8, %v1100_v4  ;;  %v1574_v6 = vcombine.high %v1517_v5, %v1549_v28  ;;  %v1252_v49 = vrot.slane %v1238_v19, %v3030_v16  ;;  %v4048_v5 = vld [vmem:[#allocation16_spill] sm:$0xff]  ;;  %v4049_v28 = vld [vmem:[#allocation18_spill] sm:$0xff]  ;;  %s2719_s3 = sshll.u32 %s2802_s2, 4  ;;  %s2720_s3 = int_to_ptr.vmem [resolvable:$false] %s2719_s3 }
 0x156   : > { %v1117_v58 = vcombine.low %v1052_v34, %v1068_v50  ;;  %v1284_v53 = vrot.slane %v4044_v51, %v3030_v16  ;;  %v1524_v43 = vrot.slane %v1510_v52, %v3030_v16  ;;  %v1556_v26 = vrot.slane %v1542_v48, %v3030_v16  ;;  %p2722_p5 = scmp.lt.s32.totalorder %s3925_s30, %s2720_s3 }
 0x157   : > { %v1157_v30 = vrot.slane %v1149_v57, %v3030_v16  ;;  %v1494_v42 = vcombine.high %v3454_v10, %v3473_v37  ;;  %v1204_v20 = vrot.slane %v1190_v61, %v2996_v55  ;;  %v1150_v38 = vcombine.high %v1084_v8, %v1100_v4 }
 0x158   : > { %v1125_v23 = vrot.slane %v1117_v58, %v3030_v16  ;;  %v1303_v14 = vcombine.low %v1252_v49, %v1284_v53  ;;  %v1575_v63 = vcombine.low %v1524_v43, %v1556_v26  ;;  %v1188_v46 = vrot.slane %v1174_v24, %v2996_v55 }
 0x159   : > { %1699 = vrot.lane.b32.xlu1 %v1301_v15, %s2793_s4  ;;  %1729 = vrot.lane.b32.xlu0 %v1167_v54, %s2795_s11  ;;  %v4046_v54 = vld [vmem:[#allocation20_spill] sm:$0xff]  ;;  %v1304_v31 = vcombine.high %v1252_v49, %v1284_v53  ;;  %v1476_v39 = vrot.slane %v1462_v22, %v2996_v55  ;;  %v1460_v10 = vrot.slane %v1446_v13, %v2996_v55 }
 0x15a   : > { %v1169_v11 = vcombine.low %v1125_v23, %v1157_v30  ;;  %v4047_v41 = vcombine.low %v4045_v36, %v4046_v54  ;;  %v1170_v1 = vcombine.high %v1125_v23, %v1157_v30  ;;  %v1508_v2 = vrot.slane %v1494_v42, %v2996_v55 }
 0x15b   : > { %v1492_v37 = vrot.slane %v1478_v35, %v2996_v55  ;;  %v1118_v33 = vcombine.high %v1052_v34, %v1068_v50  ;;  %v1253_v15 = vcombine.low %v1188_v46, %v1204_v20  ;;  %v4050_v21 = vcombine.low %v4048_v5, %v4049_v28 }
 0x15c   : > { %v1525_v44 = vcombine.low %v1460_v10, %v1476_v39  ;;  %v1576_v4 = vcombine.high %v1524_v43, %v1556_v26  ;;  %v4051_v12 = vcombine.high %v3317_v7, %v3306_v9  ;;  %v4052_v9 = vcombine.low %v3323_v47, %v3309_v17  ;;  %v4055_v26 = vld [vmem:[#allocation23_spill] sm:$0xff] }
 0x15d   : > { %1733 = vrot.lane.b32.xlu0 %v1439_v3, %s2795_s11  ;;  %1703 = vrot.lane.b32.xlu1 %v1573_v62, %s2793_s4  ;;  %v1293_v45 = vrot.slane %v4050_v21, %v3030_v16  ;;  %v1557_v27 = vcombine.low %v1492_v37, %v1508_v2  ;;  %v1132_v3 = vrot.slane %v1118_v33, %v3030_v16  ;;  %s2721_s4 = scalar_lea.vmem %s2720_s3, 2048 }
 0x15e   : > { %v1261_v62 = vrot.slane %v1253_v15, %v3030_v16  ;;  %v1533_v8 = vrot.slane %v1525_v44, %v3030_v16  ;;  %v1254_v58 = vcombine.high %v1188_v46, %v1204_v20  ;;  %v4053_v19 = vcombine.high %v4048_v5, %v4049_v28  ;;  %p2723_p7 = scmp.lt.s32.totalorder %s2721_s4, %s2715_s29 }
 0x15f   : > { %v1565_v50 = vrot.slane %v1557_v27, %v3030_v16  ;;  %v1526_v53 = vcombine.high %v1460_v10, %v1476_v39  ;;  %v1558_v30 = vcombine.high %v1492_v37, %v1508_v2  ;;  %v4054_v48 = vcombine.high %v3323_v47, %v3309_v17 }
 0x160   : > { %v1305_v34 = vcombine.low %v1261_v62, %v1293_v45  ;;  %v1300_v51 = vrot.slane %v4053_v19, %v3030_v16  ;;  %v4058_v36 = vcombine.low %v3282_v29, %v3285_v25  ;;  %p2724_p8 = por %p2723_p7, %p2722_p5 }
 0x161   : > { %1745 = vrot.lane.b32.xlu0 %v1168_v18, %s2796_s13  ;;  %1715 = vrot.lane.b32.xlu1 %v1302_v0, %s2794_s5  ;;  %v1577_v18 = vcombine.low %v1533_v8, %v1565_v50  ;;  %v1306_v0 = vcombine.high %v1261_v62, %v1293_v45  ;;  %v1578_v52 = vcombine.high %v1533_v8, %v1565_v50 }
 0x162   : > { %v1572_v23 = vrot.slane %v1558_v30, %v3030_v16  ;;  %p2725_p9 = pnand %p2724_p8, %p2718_p4 }
 0x165   : > { %1749 = vrot.lane.b32.xlu0 %v1440_v56, %s2796_s13  ;;  %1719 = vrot.lane.b32.xlu1 %v1574_v6, %s2794_s5  ;;  %v1268_v56 = vrot.slane %v1254_v58, %v3030_v16  ;;  %v1540_v6 = vrot.slane %v1526_v53, %v3030_v16 }
 0x167   : > { %v1307_v43 = vcombine.low %v1268_v56, %v1300_v51  ;;  %v1579_v17 = vcombine.low %v1540_v6, %v1572_v23  ;;  %v1308_v13 = vcombine.high %v1268_v56, %v1300_v51  ;;  %v1580_v35 = vcombine.high %v1540_v6, %v1572_v23 }
 0x169   : > { %1761 = vrot.lane.b32.xlu0 %v1169_v11, %s2797_s14  ;;  %1731 = vrot.lane.b32.xlu1 %v1303_v14, %s2795_s11  ;;  %v4056_v11 = vld [vmem:[#allocation24_spill] sm:$0xff] }
 0x16a   : > { %v4057_v14 = vcombine.low %v4055_v26, %v4056_v11 }
 0x16b   : > { %v1588_v40 = vpop.permute.xlu1 %1587 }
 0x16c   : > { %v3584_v60 = vsel %vm1821_vm0, %v4047_v41, %v1588_v40 }
 0x16d   : > { %1765 = vrot.lane.b32.xlu0 %v1441_v32, %s2797_s14  ;;  %1735 = vrot.lane.b32.xlu1 %v1575_v63, %s2795_s11  ;;  %v1164_v32 = vrot.slane %v1150_v38, %v3030_v16 }
 0x16f   : > { %v1171_v57 = vcombine.low %v1132_v3, %v1164_v32  ;;  %v1172_v7 = vcombine.high %v1132_v3, %v1164_v32 }
 0x171   : > { %1777 = vrot.lane.b32.xlu0 %v1170_v1, %s2798_s16  ;;  %1747 = vrot.lane.b32.xlu1 %v1304_v31, %s2796_s13 }
 0x175   : > { %1781 = vrot.lane.b32.xlu0 %v4051_v12, %s2798_s16  ;;  %1751 = vrot.lane.b32.xlu1 %v1576_v4, %s2796_s13 }
 0x179   : > { %1793 = vrot.lane.b32.xlu0 %v1171_v57, %s2799_s20  ;;  %1763 = vrot.lane.b32.xlu1 %v1305_v34, %s2797_s14 }
 0x17d   : > { %1797 = vrot.lane.b32.xlu0 %v4052_v9, %s2799_s20  ;;  %1767 = vrot.lane.b32.xlu1 %v1577_v18, %s2797_s14 }
 0x181   : > { %1809 = vrot.lane.b32.xlu0 %v1172_v7, %s2800_s21  ;;  %1779 = vrot.lane.b32.xlu1 %v1306_v0, %s2798_s16 }
 0x185   : > { %1813 = vrot.lane.b32.xlu0 %v4054_v48, %s2800_s21  ;;  %1783 = vrot.lane.b32.xlu1 %v1578_v52, %s2798_s16 }
 0x187   : > { %v1590_v49 = vpop.permute.xlu0 %1589 }
 0x188   : > { %v1824_v61 = vsel %vm1821_vm0, %v4057_v14, %v1590_v49 }
 0x189   : > { %1795 = vrot.lane.b32.xlu1 %v1307_v43, %s2799_s20 }
 0x18b   : > { %v1602_v24 = vpop.permute.xlu0 %1601 }
 0x18c   : > { %v1827_v47 = vsel %vm1826_vm1, %v3501_v59, %v1602_v24 }
 0x18d   : > { %1799 = vrot.lane.b32.xlu1 %v1579_v17, %s2799_s20 }
 0x18f   : > { %v1606_v22 = vpop.permute.xlu0 %1605 }
 0x190   : > { %v1829_v42 = vsel %vm1826_vm1, %v1824_v61, %v1606_v22 }
 0x191   : > { %1811 = vrot.lane.b32.xlu1 %v1308_v13, %s2800_s21  ;;  %v4059_v13 = vlaneseq }
 0x193   : > { %v1618_v16 = vpop.permute.xlu0 %1617 }
 0x194   : > { %v1832_v63 = vsel %vm1831_vm2, %v1827_v47, %v1618_v16  ;;  %v2801_v16 = vmov 1966171168  }
 0x195   : > { %1815 = vrot.lane.b32.xlu1 %v1580_v35, %s2800_s21  ;;  %v1921_v35 = vunpack.c.l.s4 %v2801_v16 }
 0x197   : > { %v1592_v40 = vpop.permute.xlu1 %1591  ;;  %v1622_v20 = vpop.permute.xlu0 %1621 }
 0x198   : > { %v1825_v54 = vsel %vm1821_vm0, %v4058_v36, %v1592_v40  ;;  %v1834_v59 = vsel %vm1831_vm2, %v1829_v42, %v1622_v20  ;;  %v1897_v42 = vand.u32 127, %v4059_v13 }
 0x19a   : > { %v1902_v36 = vand.u32 1, %v1897_v42 }
 0x19b   : > { %v1604_v41 = vpop.permute.xlu1 %1603  ;;  %v1634_v38 = vpop.permute.xlu0 %1633 }
 0x19c   : > { %v1828_v46 = vsel %vm1826_vm1, %v3584_v60, %v1604_v41  ;;  %v1837_v1 = vsel %vm1836_vm3, %v1832_v63, %v1634_v38  ;;  %vm3705_vm15 = vcmp.eq.s32.totalorder %v1902_v36, 0 }
 0x19f   : > { %v1608_v31 = vpop.permute.xlu1 %1607  ;;  %v1638_v39 = vpop.permute.xlu0 %1637 }
 0x1a0   : > { %v1830_v10 = vsel %vm1826_vm1, %v1825_v54, %v1608_v31  ;;  %v1839_v2 = vsel %vm1836_vm3, %v1834_v59, %v1638_v39  ;;  %v1922_v54 = vunpack.c.0.s8 %v1921_v35  ;;  %v4060_v59 = vld [vmem:[#allocation8_spill] sm:$0xff]  ;;  %vm2508_vm1 = vcmask 261120  }
 0x1a1   : > { %v3689_v41 = vadd.s32 8, %v4060_v59  ;;  %v3700_v39 = vadd.s32 16, %v4060_v59 }
 0x1a3   : > { %v1620_v29 = vpop.permute.xlu1 %1619  ;;  %v1650_v25 = vpop.permute.xlu0 %1649 }
 0x1a4   : > { %v1833_v37 = vsel %vm1831_vm2, %v1828_v46, %v1620_v29  ;;  %v1842_v33 = vsel %vm1841_vm4, %v1837_v1, %v1650_v25  ;;  %v3693_v46 = vadd.s32 32, %v4060_v59  ;;  %v3696_v1 = vadd.s32 40, %v4060_v59 }
 0x1a7   : > { %v1624_v15 = vpop.permute.xlu1 %1623  ;;  %v1654_v32 = vpop.permute.xlu0 %1653 }
 0x1a8   : > { %v1835_v5 = vsel %vm1831_vm2, %v1830_v10, %v1624_v15  ;;  %v1844_v60 = vsel %vm1841_vm4, %v1839_v2, %v1654_v32  ;;  %v2256_v2 = vand.u32 1, %v4060_v59  ;;  %v3710_v15 = vsub.s32 %v1922_v54, %v4060_v59 }
 0x1a9   : > { %v2263_v32 = vand.u32 1, %v3689_v41 }
 0x1aa   : > { %vm3774_vm0 = vcmp.eq.s32.totalorder %v2256_v2, 0 }
 0x1ab   : > { %v1636_v28 = vpop.permute.xlu1 %1635  ;;  %v1666_v21 = vpop.permute.xlu0 %1665  ;;  %vm3784_vm2 = vcmp.eq.s32.totalorder %v2263_v32, 0 }
 0x1ac   : > { %v1838_v45 = vsel %vm1836_vm3, %v1833_v37, %v1636_v28  ;;  %v1847_v63 = vsel %vm1846_vm5, %v1842_v33, %v1666_v21  ;;  %v2291_v28 = vand.u32 1, %v3696_v1  ;;  %v3717_v21 = vadd.s32 24, %v4060_v59 }
 0x1ae   : > { %v2277_v42 = vand.u32 1, %v3717_v21 }
 0x1af   : > { %v1640_v44 = vpop.permute.xlu1 %1639  ;;  %v1670_v27 = vpop.permute.xlu0 %1669 }
 0x1b0   : > { %v1840_v4 = vsel %vm1836_vm3, %v1835_v5, %v1640_v44  ;;  %v3654_v12 = vsel %vm1846_vm5, %v1844_v60, %v1670_v27  ;;  %v2284_v60 = vand.u32 1, %v3693_v46 }
 0x1b2   : > { %vm3806_vm3 = vcmp.eq.s32.totalorder %v2284_v60, 0 }
 0x1b3   : > { %v1652_v3 = vpop.permute.xlu1 %1651  ;;  %v1682_v62 = vpop.permute.xlu0 %1681 }
 0x1b4   : > { %v3657_v8 = vsel %vm1841_vm4, %v1838_v45, %v1652_v3  ;;  %v1852_v38 = vsel %vm1851_vm6, %v1847_v63, %v1682_v62 }
 0x1b7   : > { %v1656_v50 = vpop.permute.xlu1 %1655  ;;  %v1686_v57 = vpop.permute.xlu0 %1685 }
 0x1b8   : > { %v3660_v34 = vsel %vm1841_vm4, %v1840_v4, %v1656_v50  ;;  %v1854_v45 = vsel %vm1851_vm6, %v3654_v12, %v1686_v57  ;;  %v2270_v4 = vand.u32 1, %v3700_v39  ;;  %vm3815_vm4 = vcmp.eq.s32.totalorder %v2291_v28, 0 }
 0x1bb   : > { %v1668_v18 = vpop.permute.xlu1 %1667  ;;  %v1698_v9 = vpop.permute.xlu0 %1697 }
 0x1bc   : > { %v1857_v31 = vsel %vm1856_vm7, %v1852_v38, %v1698_v9  ;;  %v1848_v44 = vsel %vm1846_vm5, %v3657_v8, %v1668_v18 }
 0x1bf   : > { %v1672_v7 = vpop.permute.xlu1 %1671  ;;  %v1702_v0 = vpop.permute.xlu0 %1701 }
 0x1c0   : > { %v1850_v3 = vsel %vm1846_vm5, %v3660_v34, %v1672_v7  ;;  %v1859_v62 = vsel %vm1856_vm7, %v1854_v45, %v1702_v0  ;;  %vm3866_vm5 = vcmp.eq.s32.totalorder %v2270_v4, 0 }
 0x1c3   : > { %v1684_v58 = vpop.permute.xlu1 %1683  ;;  %v1714_v19 = vpop.permute.xlu0 %1713 }
 0x1c4   : > { %v1862_v10 = vsel %vm1861_vm8, %v1857_v31, %v1714_v19  ;;  %v1853_v50 = vsel %vm1851_vm6, %v1848_v44, %v1684_v58 }
 0x1c7   : > { %v1688_v51 = vpop.permute.xlu1 %1687  ;;  %v1718_v53 = vpop.permute.xlu0 %1717 }
 0x1c8   : > { %v1855_v19 = vsel %vm1851_vm6, %v1850_v3, %v1688_v51  ;;  %v1864_v12 = vsel %vm1861_vm8, %v1859_v62, %v1718_v53  ;;  %vm3899_vm6 = vcmp.eq.s32.totalorder %v2277_v42, 0 }
 0x1cb   : > { %v1700_v30 = vpop.permute.xlu1 %1699  ;;  %v1730_v52 = vpop.permute.xlu0 %1729 }
 0x1cc   : > { %v1867_v29 = vsel %vm1866_vm9, %v1862_v10, %v1730_v52  ;;  %v1858_v57 = vsel %vm1856_vm7, %v1853_v50, %v1700_v30 }
 0x1cf   : > { %v3662_v48 = vpop.permute.xlu1 %1703  ;;  %v3664_v56 = vpop.permute.xlu0 %1733 }
 0x1d0   : > { %v1869_v34 = vsel %vm1866_vm9, %v1864_v12, %v3664_v56 }
 0x1d3   : > { %v3666_v6 = vpop.permute.xlu1 %1715  ;;  %v1746_v23 = vpop.permute.xlu0 %1745 }
 0x1d4   : > { %v1872_v5 = vsel %vm1871_vm10, %v1867_v29, %v1746_v23  ;;  %v1860_v23 = vsel %vm1856_vm7, %v1855_v19, %v3662_v48  ;;  %v1863_v7 = vsel %vm1861_vm8, %v1858_v57, %v3666_v6 }
 0x1d7   : > { %v3668_v49 = vpop.permute.xlu1 %1719  ;;  %v3670_v43 = vpop.permute.xlu0 %1749 }
 0x1d8   : > { %v1865_v58 = vsel %vm1861_vm8, %v1860_v23, %v3668_v49  ;;  %v1874_v51 = vsel %vm1871_vm10, %v1869_v34, %v3670_v43 }
 0x1db   : > { %v3672_v26 = vpop.permute.xlu1 %1731  ;;  %v1762_v11 = vpop.permute.xlu0 %1761 }
 0x1dc   : > { %v1877_v27 = vsel %vm1876_vm11, %v1872_v5, %v1762_v11  ;;  %v1868_v53 = vsel %vm1866_vm9, %v1863_v7, %v3672_v26 }
 0x1df   : > { %v3674_v14 = vpop.permute.xlu1 %1735  ;;  %v3676_v61 = vpop.permute.xlu0 %1765 }
 0x1e0   : > { %v1870_v48 = vsel %vm1866_vm9, %v1865_v58, %v3674_v14  ;;  %v1879_v56 = vsel %vm1876_vm11, %v1874_v51, %v3676_v61 }
 0x1e3   : > { %v3678_v24 = vpop.permute.xlu1 %1747  ;;  %v1778_v17 = vpop.permute.xlu0 %1777 }
 0x1e4   : > { %v1882_v9 = vsel %vm1881_vm12, %v1877_v27, %v1778_v17  ;;  %v1873_v49 = vsel %vm1871_vm10, %v1868_v53, %v3678_v24 }
 0x1e7   : > { %v3680_v47 = vpop.permute.xlu1 %1751  ;;  %v3682_v22 = vpop.permute.xlu0 %1781 }
 0x1e8   : > { %v1875_v43 = vsel %vm1871_vm10, %v1870_v48, %v3680_v47  ;;  %v1884_v26 = vsel %vm1881_vm12, %v1879_v56, %v3682_v22  ;;  %v3769_v22 = vadd.s32 48, %v4060_v59 }
 0x1eb   : > { %v3686_v40 = vpop.permute.xlu1 %1763  ;;  %v1794_v20 = vpop.permute.xlu0 %1793 }
 0x1ec   : > { %v1887_v8 = vsel %vm1886_vm13, %v1882_v9, %v1794_v20  ;;  %v1878_v24 = vsel %vm1876_vm11, %v1873_v49, %v3686_v40  ;;  %v4065_v40 = vld [vmem:[#allocation9_spill] sm:$0xff] }
 0x1ef   : > { %v1768_v25 = vpop.permute.xlu1 %1767  ;;  %v1798_v37 = vpop.permute.xlu0 %1797 }
 0x1f0   : > { %v1889_v14 = vsel %vm1886_vm13, %v1884_v26, %v1798_v37  ;;  %v1880_v63 = vsel %vm1876_vm11, %v1875_v43, %v1768_v25 }
 0x1f3   : > { %v1780_v18 = vpop.permute.xlu1 %1779  ;;  %v1810_v52 = vpop.permute.xlu0 %1809 }
 0x1f4   : > { %v1892_v0 = vsel %vm1891_vm14, %v1887_v8, %v1810_v52  ;;  %v1883_v38 = vsel %vm1881_vm12, %v1878_v24, %v1780_v18 }
 0x1f5   : > { %v1911_v30 = vsel %vm3705_vm15, %v1892_v0, 0.0 }
 0x1f6   : > { %v1919_v6 = vcombine.high %v1911_v30, %v1911_v30  ;;  %v1926_v11 = vrot.slane %v1911_v30, %v3710_v15 }
 0x1f7   : > { %v1784_v17 = vpop.permute.xlu1 %1783  ;;  %v1814_v13 = vpop.permute.xlu0 %1813 }
 0x1f8   : > { %v1933_v61 = vrot.slane %v1919_v6, %v3710_v15  ;;  %v1934_v16 = vcombine.high %v1926_v11, %v1926_v11  ;;  %v1942_v35 = vrot.slane %v1926_v11, %v3710_v15  ;;  %v1894_v47 = vsel %vm1891_vm14, %v1889_v14, %v1814_v13 }
 0x1f9   : > { %v1885_v29 = vsel %vm1881_vm12, %v1880_v63, %v1784_v17  ;;  %v1913_v25 = vsel %vm3705_vm15, %v1894_v47, 0.0 }
 0x1fa   : > { %v1935_v20 = vcombine.high %v1933_v61, %v1933_v61  ;;  %v1949_v36 = vrot.slane %v1933_v61, %v3710_v15  ;;  %v1956_v54 = vrot.slane %v1934_v16, %v3710_v15  ;;  %v1964_v41 = vcombine.high %v1942_v35, %v1942_v35 }
 0x1fb   : > { %v2118_v10 = vrot.slane %v1942_v35, %v4065_v40  ;;  %v1796_v37 = vpop.permute.xlu1 %1795  ;;  %v2017_v50 = vcombine.high %v1913_v25, %v1913_v25  ;;  %v2024_v9 = vrot.slane %v1913_v25, %v3710_v15 }
 0x1fc   : > { %v1963_v5 = vrot.slane %v1935_v20, %v3710_v15  ;;  %v1965_v45 = vcombine.high %v1949_v36, %v1949_v36  ;;  %v1966_v44 = vcombine.high %v1956_v54, %v1956_v54  ;;  %v2122_v27 = vrot.slane %v1956_v54, %v4065_v40 }
 0x1fd   : > { %v2126_v3 = vrot.slane %v1964_v41, %v4065_v40  ;;  %v2134_v62 = vrot.slane %v1949_v36, %v4065_v40  ;;  %v2031_v32 = vrot.slane %v2017_v50, %v3710_v15  ;;  %v2032_v52 = vcombine.high %v2024_v9, %v2024_v9 }
 0x1fe   : > { %v1967_v19 = vcombine.high %v1963_v5, %v1963_v5  ;;  %v2130_v12 = vrot.slane %v1966_v44, %v4065_v40  ;;  %v2138_v57 = vrot.slane %v1963_v5, %v4065_v40  ;;  %v2142_v8 = vrot.slane %v1965_v45, %v4065_v40 }
 0x1ff   : > { %v2356_v18 = vcombine.low %v2118_v10, %v2122_v27  ;;  %v2040_v23 = vrot.slane %v2024_v9, %v3710_v15  ;;  %v1800_v34 = vpop.permute.xlu1 %1799  ;;  %v1888_v51 = vsel %vm1886_vm13, %v1883_v38, %v1796_v37  ;;  %v2033_v30 = vcombine.high %v2031_v32, %v2031_v32 }
 0x200   : > { %v2146_v7 = vrot.slane %v1967_v19, %v4065_v40  ;;  %v2357_v0 = vcombine.low %v2126_v3, %v2130_v12  ;;  %v2373_v58 = vcombine.low %v2134_v62, %v2138_v57  ;;  %v2047_v48 = vrot.slane %v2031_v32, %v3710_v15 }
 0x201   : > { %v2364_v53 = vrot.slane %v2356_v18, %v2996_v55  ;;  %v2054_v56 = vrot.slane %v2032_v52, %v3710_v15  ;;  %v2062_v26 = vcombine.high %v2040_v23, %v2040_v23  ;;  %v2061_v17 = vrot.slane %v2033_v30, %v3710_v15 }
 0x202   : > { %v2371_v6 = vrot.slane %v2357_v0, %v2996_v55  ;;  %v2374_v11 = vcombine.low %v2142_v8, %v2146_v7  ;;  %v2381_v49 = vrot.slane %v2373_v58, %v2996_v55  ;;  %v2063_v13 = vcombine.high %v2047_v48, %v2047_v48 }
 0x203   : > { %v2064_v14 = vcombine.high %v2054_v56, %v2054_v56  ;;  %v2182_v61 = vrot.slane %v2040_v23, %v4065_v40  ;;  %v1812_v16 = vpop.permute.xlu1 %1811  ;;  %v2186_v46 = vrot.slane %v2054_v56, %v4065_v40  ;;  %v2190_v60 = vrot.slane %v2062_v26, %v4065_v40 }
 0x204   : > { %v2372_v35 = vcombine.low %v2364_v53, %v2371_v6  ;;  %v2388_v24 = vrot.slane %v2374_v11, %v2996_v55  ;;  %v2065_v47 = vcombine.high %v2061_v17, %v2061_v17  ;;  %v2198_v36 = vrot.slane %v2047_v48, %v4065_v40 }
 0x205   : > { %v2194_v20 = vrot.slane %v2064_v14, %v4065_v40  ;;  %v2202_v54 = vrot.slane %v2061_v17, %v4065_v40  ;;  %v2206_v1 = vrot.slane %v2063_v13, %v4065_v40  ;;  %v2424_v28 = vcombine.low %v2182_v61, %v2186_v46 }
 0x206   : > { %v2389_v41 = vcombine.low %v2381_v49, %v2388_v24  ;;  %v2500_v38 = vsel %vm3774_vm0, %v2372_v35, 0.0  ;;  %v2210_v10 = vrot.slane %v2065_v47, %v4065_v40  ;;  %v1890_v5 = vsel %vm1886_vm13, %v1885_v29, %v1800_v34 }
 0x207   : > { %2509 = vst.msk [vmem:[%s3827_s24] sm:$0xff] %vm2508_vm1, %v2500_v38  ;;  %v2425_v25 = vcombine.low %v2190_v60, %v2194_v20  ;;  %v2441_v37 = vcombine.low %v2198_v36, %v2202_v54  ;;  %v1816_v45 = vpop.permute.xlu1 %1815  ;;  %v1893_v44 = vsel %vm1891_vm14, %v1888_v51, %v1812_v16  ;;  %v3837_v27 = vadd.s32 56, %v4060_v59 }
 0x208   : > { %v2501_v31 = vsel %vm3784_vm2, %v2389_v41, 0.0  ;;  %v1895_v3 = vsel %vm1891_vm14, %v1890_v5, %v1816_v45  ;;  %v2432_v62 = vrot.slane %v2424_v28, %v2996_v55  ;;  %v2442_v9 = vcombine.low %v2206_v1, %v2210_v10 }
 0x209   : > { %2510 = vst.msk [vmem:[%s3827_s24 + $0x8] sm:$0xff] %vm2508_vm1, %v2501_v31  ;;  %v2439_v50 = vrot.slane %v2425_v25, %v2996_v55  ;;  %v1912_v29 = vsel %vm3705_vm15, %v1893_v44, 0.0  ;;  %v2449_v2 = vrot.slane %v2441_v37, %v2996_v55  ;;  %v1914_v59 = vsel %vm3705_vm15, %v1895_v3, 0.0 }
 0x20a   : > { %v1968_v19 = vcombine.high %v1912_v29, %v1912_v29  ;;  %v1975_v12 = vrot.slane %v1912_v29, %v3710_v15  ;;  %v2456_v8 = vrot.slane %v2442_v9, %v2996_v55  ;;  %v2066_v18 = vcombine.high %v1914_v59, %v1914_v59 }
 0x20b   : > { %v2440_v57 = vcombine.low %v2432_v62, %v2439_v50  ;;  %v2073_v32 = vrot.slane %v1914_v59, %v3710_v15  ;;  %v2298_v7 = vand.u32 1, %v3769_v22 }
 0x20c   : > { %v1982_v52 = vrot.slane %v1968_v19, %v3710_v15  ;;  %v1983_v23 = vcombine.high %v1975_v12, %v1975_v12  ;;  %v1991_v34 = vrot.slane %v1975_v12, %v3710_v15  ;;  %v2457_v0 = vcombine.low %v2449_v2, %v2456_v8 }
 0x20d   : > { %v2504_v58 = vsel %vm3806_vm3, %v2440_v57, 0.0  ;;  %v2080_v33 = vrot.slane %v2066_v18, %v3710_v15  ;;  %v2081_v51 = vcombine.high %v2073_v32, %v2073_v32  ;;  %v2089_v26 = vrot.slane %v2073_v32, %v3710_v15 }
 0x20e   : > { %2513 = vst.msk [vmem:[%s3827_s24 + $0x20] sm:$0xff] %vm2508_vm1, %v2504_v58  ;;  %v1984_v53 = vcombine.high %v1982_v52, %v1982_v52  ;;  %v1998_v30 = vrot.slane %v1982_v52, %v3710_v15  ;;  %v2005_v48 = vrot.slane %v1983_v23, %v3710_v15  ;;  %v2013_v56 = vcombine.high %v1991_v34, %v1991_v34 }
 0x20f   : > { %v2505_v6 = vsel %vm3815_vm4, %v2457_v0, 0.0  ;;  %v2150_v49 = vrot.slane %v1991_v34, %v4065_v40  ;;  %v2082_v43 = vcombine.high %v2080_v33, %v2080_v33  ;;  %v2096_v4 = vrot.slane %v2080_v33, %v3710_v15 }
 0x210   : > { %2514 = vst.msk [vmem:[%s3827_s24 + $0x28] sm:$0xff] %vm2508_vm1, %v2505_v6  ;;  %v2012_v17 = vrot.slane %v1984_v53, %v3710_v15  ;;  %v2014_v13 = vcombine.high %v1998_v30, %v1998_v30  ;;  %v2015_v14 = vcombine.high %v2005_v48, %v2005_v48  ;;  %v2154_v61 = vrot.slane %v2005_v48, %v4065_v40 }
 0x211   : > { %v2158_v16 = vrot.slane %v2013_v56, %v4065_v40  ;;  %v2166_v39 = vrot.slane %v1998_v30, %v4065_v40  ;;  %v2103_v35 = vrot.slane %v2081_v51, %v3710_v15  ;;  %v2110_v20 = vrot.slane %v2082_v43, %v3710_v15 }
 0x212   : > { %v2016_v24 = vcombine.high %v2012_v17, %v2012_v17  ;;  %v2162_v63 = vrot.slane %v2015_v14, %v4065_v40  ;;  %v2170_v46 = vrot.slane %v2012_v17, %v4065_v40  ;;  %v2174_v60 = vrot.slane %v2014_v13, %v4065_v40 }
 0x213   : > { %v2390_v47 = vcombine.low %v2150_v49, %v2154_v61  ;;  %v2111_v36 = vcombine.high %v2089_v26, %v2089_v26  ;;  %v2112_v54 = vcombine.high %v2096_v4, %v2096_v4  ;;  %v2113_v28 = vcombine.high %v2103_v35, %v2103_v35 }
 0x214   : > { %v2178_v41 = vrot.slane %v2016_v24, %v4065_v40  ;;  %v2391_v38 = vcombine.low %v2158_v16, %v2162_v63  ;;  %v2407_v1 = vcombine.low %v2166_v39, %v2170_v46  ;;  %v2114_v25 = vcombine.high %v2110_v20, %v2110_v20 }
 0x215   : > { %v2398_v10 = vrot.slane %v2390_v47, %v2996_v55  ;;  %v2214_v37 = vrot.slane %v2089_v26, %v4065_v40  ;;  %v2218_v5 = vrot.slane %v2103_v35, %v4065_v40  ;;  %v2222_v15 = vrot.slane %v2111_v36, %v4065_v40 }
 0x216   : > { %v2405_v45 = vrot.slane %v2391_v38, %v2996_v55  ;;  %v2408_v31 = vcombine.low %v2174_v60, %v2178_v41  ;;  %v2415_v44 = vrot.slane %v2407_v1, %v2996_v55  ;;  %v2226_v3 = vrot.slane %v2113_v28, %v4065_v40 }
 0x217   : > { %v2230_v62 = vrot.slane %v2096_v4, %v4065_v40  ;;  %v2234_v50 = vrot.slane %v2110_v20, %v4065_v40  ;;  %v2238_v9 = vrot.slane %v2112_v54, %v4065_v40  ;;  %v2242_v19 = vrot.slane %v2114_v25, %v4065_v40 }
 0x218   : > { %v2406_v29 = vcombine.low %v2398_v10, %v2405_v45  ;;  %v2422_v2 = vrot.slane %v2408_v31, %v2996_v55  ;;  %v2458_v12 = vcombine.low %v2214_v37, %v2218_v5  ;;  %v2305_v57 = vand.u32 1, %v3837_v27 }
 0x219   : > { %v2459_v8 = vcombine.low %v2222_v15, %v2226_v3  ;;  %v2475_v18 = vcombine.low %v2230_v62, %v2234_v50  ;;  %v2476_v23 = vcombine.low %v2238_v9, %v2242_v19  ;;  %vm2354_vm7 = vcmp.eq.s32.totalorder %v2298_v7, 0 }
 0x21a   : > { %v2423_v32 = vcombine.low %v2415_v44, %v2422_v2  ;;  %v2502_v52 = vsel %vm3866_vm5, %v2406_v29, 0.0  ;;  %v2466_v40 = vrot.slane %v2458_v12, %v2996_v55  ;;  %vm2355_vm8 = vcmp.eq.s32.totalorder %v2305_v57, 0 }
 0x21b   : > { %2511 = vst.msk [vmem:[%s3827_s24 + $0x10] sm:$0xff] %vm2508_vm1, %v2502_v52  ;;  %v2473_v21 = vrot.slane %v2459_v8, %v2996_v55  ;;  %v2483_v27 = vrot.slane %v2475_v18, %v2996_v55  ;;  %v2490_v34 = vrot.slane %v2476_v23, %v2996_v55 }
 0x21c   : > { %v2503_v42 = vsel %vm3899_vm6, %v2423_v32, 0.0 }
 0x21d   : > { %2512 = vst.msk [vmem:[%s3827_s24 + $0x18] sm:$0xff] %vm2508_vm1, %v2503_v42  ;;  %v2474_v0 = vcombine.low %v2466_v40, %v2473_v21  ;;  %v2491_v58 = vcombine.low %v2483_v27, %v2490_v34 }
 0x21f   : > { %v2506_v33 = vsel %vm2354_vm7, %v2474_v0, 0.0  ;;  %v2507_v22 = vsel %vm2355_vm8, %v2491_v58, 0.0 }
 0x220   : > { %2515 = vst.msk [vmem:[%s3827_s24 + $0x30] sm:$0xff] %vm2508_vm1, %v2506_v33  ;;  %2516 = vst.msk [vmem:[%s3827_s24 + $0x38] sm:$0xff] %vm2508_vm1, %v2507_v22 }
 0x221   : > { %2728 = shalt.err (!%p2725_p9)
}
 0x222   : > { %s2729_s5 = scalar_lea.hbm %s3923_s25, 1024  ;;  %s2733_s14 = scalar_lea.hbm %s3973_s1, 4096 }
 0x223   : > { %p2730_p13 = scmp.ne.s32.totalorder %s3923_s25, %s2729_s5  ;;  %p2734_p2 = scmp.lt.s32.totalorder %s3923_s25, %s3973_s1 }
 0x224   : > { %p2735_p3 = scmp.lt.s32.totalorder %s2733_s14, %s2729_s5 }
 0x225   : > { %p2731_p1 = pnand %p2730_p13, %p4076_p11 }
 0x226   : > { %p2736_p6 = por %p2735_p3, %p2734_p2 }
 0x227   : > { %p2732_p0 = pneg %p2731_p1 }
 0x229   : > { %p2737_p10 = pnand %p2736_p6, %p2732_p0 }
 0x22b   : > { %2740 = shalt.err (!%p2737_p10)
}
 0x22c   : > { %s2803_s21 = smov 128  }
 0x22d   : > { %2622 = dma.vmem_to_hbm [thread:$0]  (%p4076_p11), %s3925_s30, 1024, %s3923_s25, %s2518_s27, %s2803_s21, %s2803_s21, %s2789_s28  }
 0x22e PF: > { %p2633_p12 = scmp.ge.s32.totalorder %s2779_s9, 2  ;;  %s2546_s22 = sand.u32 1, %s2767_s6  }
 0x22f   : > { %p4077_p4 = scmp.ne.s32.totalorder %s4005_s19, 0  ;;  %s2547_s24 = scalar_lea.sflag [#allocation4], %s2546_s22 }
 0x231   : > { %p2629_p5 = pnand %p2633_p12, %p4077_p4 }
 0x233   : > { %p2630_p7 = pneg %p2629_p5 }
 0x235   : > { %2762 = dma.done.wait (%p2630_p7), %s2547_s24, 1024  }
 0x236   : > { %2764 = vsyncadd (%p2630_p7), %s2547_s24, 4294966272  ;;  %p14_p8 = scmp.ge.s32.totalorder %s2839_s12, 6   ;;  %s4078_s6 = smov %s2771_s7 }
 0x237   : > { %s4079_s7 = smov %s2775_s8  ;;  %s4080_s8 = smov %s2851_s15 }
 0x238   : > { %s4081_s9 = smov %s2839_s12  ;;  %16 = sbr.rel (!%p14_p8) target bundleno = 5 (0x5), region = 69 }
 0x23d   :  { %2552 = vsyncpa [#allocation3], 1 }
 0x23e   :  { %2554 = vsyncpa [#allocation3 + $0x1], 1 }
 0x23f   :  { %2555 = vsyncpa [#allocation4], 1 }
 0x240   :  { %2557 = vsyncpa [#allocation4 + $0x1], 1 }

</bundles_post_ra>
